<compile_context>
chip_gen: v7x
topology: tpu7x:2x2x1
jax: 0.10.0
libtpu: 0.0.40
codegen_flags: <defaults>
</compile_context>

<pallas_src>
import functools
import numpy as np
import jax
import jax.numpy as jnp
from jax.experimental import pallas as pl
from jax.experimental.pallas import tpu as pltpu


# ----------------------------- tiling helpers ------------------------------

# bf16 packs 16 rows per sublane group -> keep M tiles >= 16; prefer 256-multiples
# on the lane / contraction axes so the 256x256 MXU (v6e/v7x) stays fed (128 still
# fine for v5e's 128^2 MXU).
_M_TILES = (512, 256, 128, 64, 32, 16)
_N_TILES = (1024, 512, 256, 128)
_K_TILES = (1024, 512, 256, 128)

_DEFAULT_SCOPED_VMEM = 24 * 1024 * 1024      # stay inside the 32 MiB scoped default
_MAX_VMEM_LIMIT = 60 * 1024 * 1024           # headroom under v7x's 64 MiB physical VMEM


def _pick_tile(dim, candidates):
    """Largest candidate that evenly divides `dim`, else the full extent."""
    for c in candidates:
        if dim >= c and dim % c == 0:
            return c
    return dim


def _mosaic_params(semantics, working_set_bytes=0):
    """Only raise vmem_limit_bytes when the estimated working set needs it."""
    kwargs = dict(dimension_semantics=semantics)
    if working_set_bytes > _DEFAULT_SCOPED_VMEM:
        kwargs["vmem_limit_bytes"] = int(min(working_set_bytes * 1.5, _MAX_VMEM_LIMIT))
    return pltpu.CompilerParams(**kwargs)


# ----------------------------- tiled linear --------------------------------

def _linear_kernel(x_ref, w_ref, b_ref, o_ref, acc_ref):
    k = pl.program_id(2)

    @pl.when(k == 0)
    def _():
        acc_ref[...] = jnp.zeros_like(acc_ref)

    acc_ref[...] += jnp.dot(x_ref[...], w_ref[...],
                            preferred_element_type=jnp.float32)

    @pl.when(k == pl.num_programs(2) - 1)
    def _():
        o_ref[...] = (acc_ref[...] + b_ref[...]).astype(o_ref.dtype)


def linear_pallas(x, w, b=None, out_dtype=jnp.bfloat16):
    """y = x @ w + b.  x:(M,K); w:(K,N) pre-transposed bf16; b:(N,)."""
    M, K = x.shape
    N = w.shape[1]
    x = x.astype(w.dtype)
    b2 = (jnp.zeros((1, N), jnp.float32) if b is None
          else b.astype(jnp.float32).reshape(1, N))
    tm = _pick_tile(M, _M_TILES)
    tn = _pick_tile(N, _N_TILES)
    tk = _pick_tile(K, _K_TILES)
    grid = (M // tm, N // tn, K // tk)
    ws = (2 * (tm * tk + tk * tn + tn) * x.dtype.itemsize
          + 2 * tm * tn * np.dtype(out_dtype).itemsize + tm * tn * 4)
    return pl.pallas_call(
        _linear_kernel,
        out_shape=jax.ShapeDtypeStruct((M, N), out_dtype),
        grid=grid,
        in_specs=[pl.BlockSpec((tm, tk), lambda i, j, k: (i, k)),
                  pl.BlockSpec((tk, tn), lambda i, j, k: (k, j)),
                  pl.BlockSpec((1, tn), lambda i, j, k: (0, j))],
        out_specs=pl.BlockSpec((tm, tn), lambda i, j, k: (i, j)),
        scratch_shapes=[pltpu.VMEM((tm, tn), jnp.float32)],
        compiler_params=_mosaic_params(("parallel", "parallel", "arbitrary"), ws),
    )(x, w, b2)


# ------------------------ fused residual-add + LayerNorm --------------------

def _add_ln_kernel(x_ref, r_ref, g_ref, b_ref, o_ref, *, eps):
    x = x_ref[...].astype(jnp.float32) + r_ref[...].astype(jnp.float32)
    mean = jnp.mean(x, axis=-1, keepdims=True)
    xc = x - mean
    var = jnp.mean(xc * xc, axis=-1, keepdims=True)
    o_ref[...] = (xc * jax.lax.rsqrt(var + eps) * g_ref[...]
                  + b_ref[...]).astype(o_ref.dtype)


def add_layernorm_pallas(x, res, gamma, beta, eps=1e-5):
    """LayerNorm(x + res), row-tiled; bf16 activation stream, f32 internal math."""
    M, D = x.shape
    tm = _pick_tile(M, _M_TILES)
    kern = functools.partial(_add_ln_kernel, eps=eps)
    return pl.pallas_call(
        kern,
        out_shape=jax.ShapeDtypeStruct((M, D), jnp.bfloat16),
        grid=(M // tm,),
        in_specs=[pl.BlockSpec((tm, D), lambda i: (i, 0)),
                  pl.BlockSpec((tm, D), lambda i: (i, 0)),
                  pl.BlockSpec((1, D), lambda i: (0, 0)),
                  pl.BlockSpec((1, D), lambda i: (0, 0))],
        out_specs=pl.BlockSpec((tm, D), lambda i: (i, 0)),
        compiler_params=pltpu.CompilerParams(dimension_semantics=("parallel",)),
    )(x, res, gamma.reshape(1, D), beta.reshape(1, D))


# --------------- fused attention (QKV proj + softmax + out proj) ------------

def _attn_kernel(x_ref, bias_ref, wq_ref, bq_ref, wk_ref, bk_ref,
                 wv_ref, bv_ref, wo_ref, bo_ref, o_ref, acc_ref, *, scale):
    h = pl.program_id(1)
    x = x_ref[0].astype(jnp.bfloat16)                       # (T, d), resident across H
    # per-head projections: contiguous (d, hd) weight blocks, no slicing needed
    q = jnp.dot(x, wq_ref[0], preferred_element_type=jnp.float32) + bq_ref[0]
    k = jnp.dot(x, wk_ref[0], preferred_element_type=jnp.float32) + bk_ref[0]
    v = jnp.dot(x, wv_ref[0], preferred_element_type=jnp.float32) + bv_ref[0]
    # QK^T via dot_general contracting last dims (no in-kernel transpose)
    s = jax.lax.dot_general(q.astype(jnp.bfloat16), k.astype(jnp.bfloat16),
                            (((1,), (1,)), ((), ())),
                            preferred_element_type=jnp.float32)
    s = s * scale + bias_ref[0]                             # (T, T) + (1, T) key bias
    m = jnp.max(s, axis=-1, keepdims=True)
    e = jnp.exp(s - m)
    p = e * pl.reciprocal(jnp.sum(e, axis=-1, keepdims=True), approx=True)
    head = jnp.dot(p.astype(jnp.bfloat16), v.astype(jnp.bfloat16),
                   preferred_element_type=jnp.float32)      # (T, hd)

    @pl.when(h == 0)
    def _():
        acc_ref[...] = jnp.zeros_like(acc_ref)

    # fold this head's output through its slice of W_o into a lane-dense (T, d) acc
    acc_ref[...] += jnp.dot(head.astype(jnp.bfloat16), wo_ref[0],
                            preferred_element_type=jnp.float32)

    @pl.when(h == pl.num_programs(1) - 1)
    def _():
        o_ref[0] = (acc_ref[...] + bo_ref[...]).astype(o_ref.dtype)


def attention_pallas(x, bias, wq, bq, wk, bk, wv, bv, wo, bo, scale):
    """x:(B,T,d); bias:(B,1,T) additive key mask; per-head weights (H,d,hd)/(H,hd,d)."""
    B, T, d = x.shape
    H, _, hd = wq.shape
    kern = functools.partial(_attn_kernel, scale=scale)
    return pl.pallas_call(
        kern,
        out_shape=jax.ShapeDtypeStruct((B, T, d), jnp.bfloat16),
        grid=(B, H),
        in_specs=[pl.BlockSpec((1, T, d), lambda b, h: (b, 0, 0)),
                  pl.BlockSpec((1, 1, T), lambda b, h: (b, 0, 0)),
                  pl.BlockSpec((1, d, hd), lambda b, h: (h, 0, 0)),
                  pl.BlockSpec((1, 1, hd), lambda b, h: (h, 0, 0)),
                  pl.BlockSpec((1, d, hd), lambda b, h: (h, 0, 0)),
                  pl.BlockSpec((1, 1, hd), lambda b, h: (h, 0, 0)),
                  pl.BlockSpec((1, d, hd), lambda b, h: (h, 0, 0)),
                  pl.BlockSpec((1, 1, hd), lambda b, h: (h, 0, 0)),
                  pl.BlockSpec((1, hd, d), lambda b, h: (h, 0, 0)),
                  pl.BlockSpec((1, d), lambda b, h: (0, 0))],
        out_specs=pl.BlockSpec((1, T, d), lambda b, h: (b, 0, 0)),
        scratch_shapes=[pltpu.VMEM((T, d), jnp.float32)],
        compiler_params=pltpu.CompilerParams(
            dimension_semantics=("parallel", "arbitrary")),
    )(x, bias, wq, bq, wk, bk, wv, bv, wo, bo)


# --------------------------- fused feed-forward ------------------------------

def _ff_kernel(x_ref, w1_ref, b1_ref, w2_ref, b2_ref, o_ref, acc_ref):
    j = pl.program_id(1)

    @pl.when(j == 0)
    def _():
        acc_ref[...] = jnp.zeros_like(acc_ref)

    h = jnp.dot(x_ref[...], w1_ref[...],
                preferred_element_type=jnp.float32) + b1_ref[...]
    h = jnp.maximum(h, 0.0).astype(w2_ref.dtype)            # ReLU, back to bf16 for MXU
    acc_ref[...] += jnp.dot(h, w2_ref[...], preferred_element_type=jnp.float32)

    @pl.when(j == pl.num_programs(1) - 1)
    def _():
        o_ref[...] = (acc_ref[...] + b2_ref[...]).astype(o_ref.dtype)


def ff_pallas(x, w1, b1, w2, b2):
    """relu(x@w1+b1)@w2+b2 fused in one kernel; reduction over dff tiles."""
    M, D = x.shape
    F = w1.shape[1]
    x = x.astype(w1.dtype)
    b1 = b1.astype(jnp.float32).reshape(1, F)
    b2 = b2.astype(jnp.float32).reshape(1, D)
    tm = _pick_tile(M, _M_TILES)
    tf = _pick_tile(F, _K_TILES)
    grid = (M // tm, F // tf)
    ws = (2 * (tm * D + D * tf + tf + tf * D + D) * x.dtype.itemsize
          + 2 * tm * D * 2 + tm * D * 4)
    return pl.pallas_call(
        _ff_kernel,
        out_shape=jax.ShapeDtypeStruct((M, D), jnp.bfloat16),
        grid=grid,
        in_specs=[pl.BlockSpec((tm, D), lambda i, j: (i, 0)),
                  pl.BlockSpec((D, tf), lambda i, j: (0, j)),
                  pl.BlockSpec((1, tf), lambda i, j: (0, j)),
                  pl.BlockSpec((tf, D), lambda i, j: (j, 0)),
                  pl.BlockSpec((1, D), lambda i, j: (0, 0))],
        out_specs=pl.BlockSpec((tm, D), lambda i, j: (i, 0)),
        scratch_shapes=[pltpu.VMEM((tm, D), jnp.float32)],
        compiler_params=_mosaic_params(("parallel", "arbitrary"), ws),
    )(x, w1, b1, w2, b2)


# ---------------------- fused MoE experts (top-2 weighted) -------------------

def _moe_kernel(x_ref, w1_ref, b1_ref, w2_ref, b2_ref, wgt_ref, o_ref, acc_ref):
    e = pl.program_id(1)
    j = pl.program_id(2)

    @pl.when((e == 0) & (j == 0))
    def _():
        acc_ref[...] = jnp.zeros_like(acc_ref)

    h = jnp.dot(x_ref[...], w1_ref[0],
                preferred_element_type=jnp.float32) + b1_ref[0]
    h = jnp.maximum(h, 0.0).astype(w2_ref.dtype)
    part = jnp.dot(h, w2_ref[0], preferred_element_type=jnp.float32)
    w_e = wgt_ref[0]                                        # (tm, 1) top-2 gate weight
    acc_ref[...] += w_e * part

    @pl.when(j == pl.num_programs(2) - 1)
    def _():
        acc_ref[...] += w_e * b2_ref[0]

    @pl.when((e == pl.num_programs(1) - 1) & (j == pl.num_programs(2) - 1))
    def _():
        o_ref[...] = acc_ref[...].astype(o_ref.dtype)


def moe_experts_pallas(x, w1, b1, w2, b2, wgt):
    """sum_e wgt[e] * FF_e(x) in one kernel.
    x:(M,D); w1:(E,D,F); b1:(E,1,F); w2:(E,F,D); b2:(E,1,D); wgt:(E,M,1)."""
    M, D = x.shape
    E, _, F = w1.shape
    x = x.astype(w1.dtype)
    tm = _pick_tile(M, _M_TILES)
    tf = _pick_tile(F, _K_TILES)
    grid = (M // tm, E, F // tf)
    ws = (2 * (tm * D + D * tf + tf + tf * D + D) * x.dtype.itemsize
          + 2 * tm * 128 * 4 + 2 * tm * D * 2 + tm * D * 4)
    return pl.pallas_call(
        _moe_kernel,
        out_shape=jax.ShapeDtypeStruct((M, D), jnp.bfloat16),
        grid=grid,
        in_specs=[pl.BlockSpec((tm, D), lambda i, e, j: (i, 0)),
                  pl.BlockSpec((1, D, tf), lambda i, e, j: (e, 0, j)),
                  pl.BlockSpec((1, 1, tf), lambda i, e, j: (e, 0, j)),
                  pl.BlockSpec((1, tf, D), lambda i, e, j: (e, j, 0)),
                  pl.BlockSpec((1, 1, D), lambda i, e, j: (e, 0, 0)),
                  pl.BlockSpec((1, tm, 1), lambda i, e, j: (e, i, 0))],
        out_specs=pl.BlockSpec((tm, D), lambda i, e, j: (i, 0)),
        scratch_shapes=[pltpu.VMEM((tm, D), jnp.float32)],
        compiler_params=_mosaic_params(("parallel", "arbitrary", "arbitrary"), ws),
    )(x, w1, b1, w2, b2, wgt)


# ---------------- fused Roost-style residual output network ------------------

def _resnet_kernel(*refs, n_layers, has_res):
    x_ref = refs[0]
    o_ref = refs[-1]
    w = refs[1:-1]
    idx = 0
    fea_f32 = x_ref[...].astype(jnp.float32)
    fea = x_ref[...].astype(jnp.bfloat16)
    for li in range(n_layers):                              # static unroll, weights in VMEM
        fc_w, fc_b = w[idx], w[idx + 1]
        idx += 2
        h = jnp.dot(fea, fc_w[...], preferred_element_type=jnp.float32) + fc_b[...]
        h = jnp.where(h > 0, h, 0.01 * h)                   # LeakyReLU(0.01)
        if has_res[li]:
            rw = w[idx]
            idx += 1
            res = jnp.dot(fea, rw[...], preferred_element_type=jnp.float32)
        else:
            res = fea_f32
        fea_f32 = h + res
        fea = fea_f32.astype(jnp.bfloat16)
    out_w, out_b = w[idx], w[idx + 1]
    o_ref[...] = (jnp.dot(fea, out_w[...], preferred_element_type=jnp.float32)
                  + out_b[...]).astype(o_ref.dtype)


def resnet_pallas(x, rn_params, out_dims):
    """Whole ResidualNetwork (all layers + final projection) in one kernel."""
    M, D = x.shape
    tm = _pick_tile(M, _M_TILES)
    args = [x.astype(jnp.bfloat16)]
    in_specs = [pl.BlockSpec((tm, D), lambda i: (i, 0))]
    has_res = []
    for lyr in rn_params['layers']:
        fw = lyr['fc_w']
        fb = lyr['fc_b'].astype(jnp.float32).reshape(1, -1)
        din, dout = fw.shape
        args += [fw, fb]
        in_specs += [pl.BlockSpec((din, dout), lambda i: (0, 0)),
                     pl.BlockSpec((1, dout), lambda i: (0, 0))]
        if lyr['res_w'] is not None:
            args.append(lyr['res_w'])
            in_specs.append(pl.BlockSpec((din, dout), lambda i: (0, 0)))
            has_res.append(True)
        else:
            has_res.append(False)
    out_w = rn_params['out_w']
    out_b = rn_params['out_b'].astype(jnp.float32).reshape(1, -1)
    dlast = out_w.shape[0]
    args += [out_w, out_b]
    in_specs += [pl.BlockSpec((dlast, out_dims), lambda i: (0, 0)),
                 pl.BlockSpec((1, out_dims), lambda i: (0, 0))]
    kern = functools.partial(_resnet_kernel, n_layers=len(rn_params['layers']),
                             has_res=tuple(has_res))
    return pl.pallas_call(
        kern,
        out_shape=jax.ShapeDtypeStruct((M, out_dims), jnp.float32),
        grid=(M // tm,),
        in_specs=in_specs,
        out_specs=pl.BlockSpec((tm, out_dims), lambda i: (i, 0)),
        compiler_params=pltpu.CompilerParams(dimension_semantics=("parallel",)),
    )(*args)


# ----------------------------- model pieces --------------------------------

def make_pe_table(d_half, resolution):
    x = np.arange(resolution, dtype=np.float32).reshape(resolution, 1)
    fraction = np.tile(np.arange(d_half, dtype=np.float32).reshape(1, d_half),
                       (resolution, 1))
    pe = np.zeros((resolution, d_half), dtype=np.float32)
    pe[:, 0::2] = np.sin(x / np.power(50.0, 2 * fraction[:, 0::2] / d_half))
    pe[:, 1::2] = np.cos(x / np.power(50.0, 2 * fraction[:, 1::2] / d_half))
    return jnp.asarray(pe)


def frac_encode(pe_table, frac, resolution, log10):
    x = jnp.asarray(frac, jnp.float32)
    if log10:
        x = 0.0025 * (jnp.log2(x) ** 2)                     # matches reference (log2)
        x = jnp.minimum(x, 1.0)                             # clamp(max=1)
    x = jnp.maximum(x, 1.0 / resolution)                    # clamp(min=1/res)
    idx = (jnp.round(x * resolution).astype(jnp.int32) - 1)
    return pe_table[idx]


def mha_forward(p, x2, bias, B, T, d, H):
    x3 = x2.reshape(B, T, d)
    o = attention_pallas(x3, bias, p['wq'], p['bq'], p['wk'], p['bk'],
                         p['wv'], p['bv'], p['wo'], p['bo'],
                         float(d // H) ** -0.5)
    return o.reshape(B * T, d)


def moe_forward(p, x2, num_experts):
    logits = linear_pallas(x2, p['gate_w'], p['gate_b'], out_dtype=jnp.float32)
    scores = jax.nn.softmax(logits, axis=-1)
    importance = jnp.sum(scores, axis=0)
    load_loss = num_experts * jnp.sum(importance ** 2) / (jnp.sum(importance) ** 2 + 1e-10)
    vals, idxs = jax.lax.top_k(scores, 2)                   # top-2 gating
    # dense per-token expert weights (equivalent to masked gather/scatter routing)
    wmat = jnp.sum(jax.nn.one_hot(idxs, num_experts, dtype=jnp.float32)
                   * vals[..., None], axis=1)               # (M, E)
    wgt = wmat.T[:, :, None]                                # (E, M, 1)
    # TODO(synk): grouped top-k routing with PrefetchScalarGridSpec for large E.
    out = moe_experts_pallas(x2, p['w1'], p['b1'], p['w2'], p['b2'], wgt)
    return out, load_loss


def encoder_layer_forward(p, x2, bias, B, T, d, cfg, is_moe):
    attn = mha_forward(p['attn'], x2, bias, B, T, d, cfg['heads'])
    x2 = add_layernorm_pallas(x2, attn, p['ln1_g'], p['ln1_b'])
    if is_moe:
        ff, aux = moe_forward(p['ff'], x2, cfg['num_experts'])
    else:
        ff = ff_pallas(x2, p['ff']['w1'], p['ff']['b1'],
                       p['ff']['w2'], p['ff']['b2'])
        aux = jnp.float32(0.0)
    x2 = add_layernorm_pallas(x2, ff, p['ln2_g'], p['ln2_b'])
    return x2, aux


def madani_forward(params, src, frac, cfg):
    B, T = src.shape
    d = cfg['d_model']
    M = B * T
    # --- Embedder ---
    emb = params['cbfv'][src]                               # (B, T, feat)
    x2 = linear_pallas(emb.reshape(M, -1),
                       params['fc_mat2vec_w'], params['fc_mat2vec_b'],
                       out_dtype=jnp.float32)
    x2 = x2 * (2.0 ** params['emb_scaler'])
    # --- fractional encodings ---
    pe_scaler = 2.0 ** ((1.0 - params['pos_scaler']) ** 2)
    ple_scaler = 2.0 ** ((1.0 - params['pos_scaler_log']) ** 2)
    pe_half = frac_encode(params['pe_table'], frac, cfg['resolution'], log10=False) * pe_scaler
    ple_half = frac_encode(params['ple_table'], frac, cfg['resolution'], log10=True) * ple_scaler
    x2 = x2 + jnp.concatenate([pe_half, ple_half], axis=-1).reshape(M, d)
    # bf16 residual stream for the transformer (f32 math inside the kernels)
    x2 = x2.astype(jnp.bfloat16)
    # --- key padding mask (frac == 0) as additive bias; finite to avoid NaNs ---
    pad = (frac == 0)
    bias = jnp.where(pad, -1e30, 0.0).astype(jnp.float32)[:, None, :]   # (B,1,T)
    # --- transformer encoder: N-1 FF layers + 1 MoE layer ---
    total_aux = jnp.float32(0.0)
    for li, lp in enumerate(params['layers']):
        is_moe = (li == cfg['N'] - 1)
        x2, aux = encoder_layer_forward(lp, x2, bias, B, T, d, cfg, is_moe)
        total_aux = total_aux + aux
    # --- hide padded positions (frac == 0) ---
    x2 = jnp.where(pad.reshape(M, 1), 0.0, x2)
    # --- output residual network (one fused kernel) + masked averaging ---
    y = resnet_pallas(x2, params['output_nn'], cfg['out_dims'])
    y = y.reshape(B, T, cfg['out_dims'])
    mask3 = jnp.broadcast_to((src == 0)[..., None], (B, T, cfg['out_dims']))
    y = jnp.where(mask3, 0.0, y)
    denom = jnp.maximum(jnp.sum((~mask3).astype(jnp.float32), axis=1), 1.0)
    y = jnp.sum(y, axis=1) / denom
    c = -(-cfg['out_dims'] // 2)                            # torch.chunk(2) sizes
    output, logits = y[:, :c], y[:, c:]
    probability = jnp.ones_like(output)
    probability = probability.at[:, :logits.shape[-1]].set(jax.nn.sigmoid(logits))
    output = output * probability
    return output, total_aux


# ------------------------- deterministic parameters -------------------------

class KeyGen:
    def __init__(self, key):
        self.key = key

    def __call__(self):
        self.key, sub = jax.random.split(self.key)
        return sub


def init_linear_t(key, in_dim, out_dim, bias=True, w_dtype=jnp.bfloat16):
    """torch nn.Linear init, stored pre-transposed (in,out) and pre-cast bf16."""
    kw, kb = jax.random.split(key)
    bound = 1.0 / np.sqrt(in_dim)
    w = jax.random.uniform(kw, (out_dim, in_dim), minval=-bound, maxval=bound,
                           dtype=jnp.float32)
    wt = jnp.asarray(w.T, w_dtype)
    if not bias:
        return wt, None
    b = jax.random.uniform(kb, (out_dim,), minval=-bound, maxval=bound,
                           dtype=jnp.float32)
    return wt, b


def init_attn_params(kg, d, H):
    """Per-head (head-major) attention weights so the fused kernel never slices."""
    hd = d // H
    wq, bq = init_linear_t(kg(), d, d)
    wk, bk = init_linear_t(kg(), d, d)
    wv, bv = init_linear_t(kg(), d, d)
    wo, bo = init_linear_t(kg(), d, d)

    def per_head_in(w):                                     # (d, d) -> (H, d, hd)
        return jnp.transpose(w.reshape(d, H, hd), (1, 0, 2))

    return dict(
        wq=per_head_in(wq), bq=bq.reshape(H, 1, hd),
        wk=per_head_in(wk), bk=bk.reshape(H, 1, hd),
        wv=per_head_in(wv), bv=bv.reshape(H, 1, hd),
        wo=wo.reshape(H, hd, d), bo=bo.reshape(1, d),
    )


def init_params(key, cfg, vocab, feat):
    kg = KeyGen(key)
    d, dff, E, H = cfg['d_model'], cfg['dff'], cfg['num_experts'], cfg['heads']
    params = {}
    # synthetic mat2vec table (zero row 0 + vocab rows), stand-in for mat2vec.csv
    cbfv = jax.random.normal(kg(), (vocab, feat), jnp.float32) * 0.5
    params['cbfv'] = jnp.concatenate([jnp.zeros((1, feat), jnp.float32), cbfv], axis=0)
    params['fc_mat2vec_w'], params['fc_mat2vec_b'] = init_linear_t(kg(), feat, d)
    params['emb_scaler'] = jnp.float32(1.0)
    params['pos_scaler'] = jnp.float32(1.0)
    params['pos_scaler_log'] = jnp.float32(1.0)
    params['pe_table'] = make_pe_table(d // 2, cfg['resolution'])
    params['ple_table'] = make_pe_table(d // 2, cfg['resolution'])
    layers = []
    for li in range(cfg['N']):
        lp = {'attn': init_attn_params(kg, d, H)}
        lp['ln1_g'] = jnp.ones((d,), jnp.float32)
        lp['ln1_b'] = jnp.zeros((d,), jnp.float32)
        lp['ln2_g'] = jnp.ones((d,), jnp.float32)
        lp['ln2_b'] = jnp.zeros((d,), jnp.float32)
        if li == cfg['N'] - 1:                              # last layer: MoE feed-forward
            gate_w, gate_b = init_linear_t(kg(), d, E)
            w1s, b1s, w2s, b2s = [], [], [], []
            for _ in range(E):
                w1, b1 = init_linear_t(kg(), d, dff)
                w2, b2 = init_linear_t(kg(), dff, d)
                w1s.append(w1); b1s.append(b1.reshape(1, dff))
                w2s.append(w2); b2s.append(b2.reshape(1, d))
            lp['ff'] = dict(gate_w=gate_w, gate_b=gate_b,
                            w1=jnp.stack(w1s), b1=jnp.stack(b1s),
                            w2=jnp.stack(w2s), b2=jnp.stack(b2s))
        else:                                               # plain feed-forward
            w1, b1 = init_linear_t(kg(), d, dff)
            w2, b2 = init_linear_t(kg(), dff, d)
            lp['ff'] = dict(w1=w1, b1=b1, w2=w2, b2=b2)
        layers.append(lp)
    params['layers'] = layers
    # ResidualNetwork (roost-style), fused into a single kernel at call time
    dims = [d] + cfg['out_hidden']
    rn = {'layers': []}
    for i in range(len(dims) - 1):
        fw, fb = init_linear_t(kg(), dims[i], dims[i + 1])
        rw = (init_linear_t(kg(), dims[i], dims[i + 1], bias=False)[0]
              if dims[i] != dims[i + 1] else None)
        rn['layers'].append({'fc_w': fw, 'fc_b': fb, 'res_w': rw})
    rn['out_w'], rn['out_b'] = init_linear_t(kg(), dims[-1], cfg['out_dims'])
    params['output_nn'] = rn
    return params


# ----------------------------------- main -----------------------------------

if __name__ == "__main__":
    # small-shape config consistent with the module structure (d_model kept a
    # multiple of 128 so activation/LN/matmul stores stay lane-dense)
    cfg = dict(d_model=128, heads=4, N=2, dff=256, num_experts=4, out_dims=3,
               out_hidden=[128, 64], resolution=5000)
    B, T, vocab, feat = 2, 8, 10, 32

    key = jax.random.PRNGKey(0)
    kp, ks, kf = jax.random.split(key, 3)
    params = init_params(kp, cfg, vocab, feat)

    src = jax.random.randint(ks, (B, T), 1, vocab + 1, dtype=jnp.int32)
    frac = jax.random.uniform(kf, (B, T), minval=0.05, maxval=1.0, dtype=jnp.float32)
    # pad the last two tokens of the first sequence (src == 0, frac == 0)
    src = src.at[0, 6:].set(0)
    frac = frac.at[0, 6:].set(0.0)

    fwd = jax.jit(functools.partial(madani_forward, cfg=cfg))
    output, aux_loss = fwd(params, src, frac)
    output = jax.block_until_ready(output)
    aux_loss = jax.block_until_ready(aux_loss)
    assert output.shape == (B, -(-cfg['out_dims'] // 2))
    assert jnp.all(jnp.isfinite(output)) and jnp.isfinite(aux_loss)
    print("KERNEL_OK")
</pallas_src>

<mosaic_0001>
module attributes {stable_mosaic.version = 11 : i64} {
  func.func @_attn_kernel(%arg0: i32, %arg1: i32, %arg2: memref<1x8x128xbf16, #tpu.memory_space<vmem>>, %arg3: memref<1x1x8xf32, #tpu.memory_space<vmem>>, %arg4: memref<1x128x32xbf16, #tpu.memory_space<vmem>>, %arg5: memref<1x1x32xf32, #tpu.memory_space<vmem>>, %arg6: memref<1x128x32xbf16, #tpu.memory_space<vmem>>, %arg7: memref<1x1x32xf32, #tpu.memory_space<vmem>>, %arg8: memref<1x128x32xbf16, #tpu.memory_space<vmem>>, %arg9: memref<1x1x32xf32, #tpu.memory_space<vmem>>, %arg10: memref<1x32x128xbf16, #tpu.memory_space<vmem>>, %arg11: memref<1x128xf32, #tpu.memory_space<vmem>>, %arg12: memref<1x8x128xbf16, #tpu.memory_space<vmem>>, %arg13: memref<8x128xf32, #tpu.memory_space<vmem>>) attributes {dimension_semantics = [#tpu.dimension_semantics<parallel>, #tpu.dimension_semantics<arbitrary>], iteration_bounds = array<i64: 2, 4>, scalar_prefetch = 0 : i64, scratch_operands = 1 : i64, tpu.core_type = #tpu.core_type<tc>, window_params = [{transform_indices = @transform_0, window_bounds = array<i64: 1, 8, 128>}, {transform_indices = @transform_1, window_bounds = array<i64: 1, 1, 8>}, {transform_indices = @transform_2, window_bounds = array<i64: 1, 128, 32>}, {transform_indices = @transform_3, window_bounds = array<i64: 1, 1, 32>}, {transform_indices = @transform_4, window_bounds = array<i64: 1, 128, 32>}, {transform_indices = @transform_5, window_bounds = array<i64: 1, 1, 32>}, {transform_indices = @transform_6, window_bounds = array<i64: 1, 128, 32>}, {transform_indices = @transform_7, window_bounds = array<i64: 1, 1, 32>}, {transform_indices = @transform_8, window_bounds = array<i64: 1, 32, 128>}, {pipeline_mode = #tpu.pipeline_mode<synchronous>, transform_indices = @transform_9, window_bounds = array<i64: 1, 128>}, {transform_indices = @transform_10, window_bounds = array<i64: 1, 8, 128>}]} {
    %c0 = arith.constant 0 : index
    %c0_0 = arith.constant 0 : index
    %c0_1 = arith.constant 0 : index
    %0 = vector.load %arg2[%c0, %c0_0, %c0_1] : memref<1x8x128xbf16, #tpu.memory_space<vmem>>, vector<1x8x128xbf16>
    %1 = vector.shape_cast %0 : vector<1x8x128xbf16> to vector<8x128xbf16>
    %c0_2 = arith.constant 0 : index
    %c0_3 = arith.constant 0 : index
    %c0_4 = arith.constant 0 : index
    %2 = vector.load %arg4[%c0_2, %c0_3, %c0_4] : memref<1x128x32xbf16, #tpu.memory_space<vmem>>, vector<1x128x32xbf16>
    %3 = vector.shape_cast %2 : vector<1x128x32xbf16> to vector<128x32xbf16>
    %cst = arith.constant dense<0.000000e+00> : vector<8x32xf32>
    %4 = tpu.matmul %1, %3, %cst {dimension_numbers = #tpu.dot_dimension_numbers<[1], [0], [0], [1], [0, 0, 1, 1], [], []>} : vector<8x128xbf16>, vector<128x32xbf16>, vector<8x32xf32> -> vector<8x32xf32>
    %c0_5 = arith.constant 0 : index
    %c0_6 = arith.constant 0 : index
    %c0_7 = arith.constant 0 : index
    %5 = vector.load %arg5[%c0_5, %c0_6, %c0_7] : memref<1x1x32xf32, #tpu.memory_space<vmem>>, vector<1x1x32xf32>
    %6 = vector.shape_cast %5 : vector<1x1x32xf32> to vector<1x32xf32>
    %7 = vector.broadcast %6 : vector<1x32xf32> to vector<8x32xf32>
    %8 = arith.addf %4, %7 : vector<8x32xf32>
    %c0_8 = arith.constant 0 : index
    %c0_9 = arith.constant 0 : index
    %c0_10 = arith.constant 0 : index
    %9 = vector.load %arg6[%c0_8, %c0_9, %c0_10] : memref<1x128x32xbf16, #tpu.memory_space<vmem>>, vector<1x128x32xbf16>
    %10 = vector.shape_cast %9 : vector<1x128x32xbf16> to vector<128x32xbf16>
    %cst_11 = arith.constant dense<0.000000e+00> : vector<8x32xf32>
    %11 = tpu.matmul %1, %10, %cst_11 {dimension_numbers = #tpu.dot_dimension_numbers<[1], [0], [0], [1], [0, 0, 1, 1], [], []>} : vector<8x128xbf16>, vector<128x32xbf16>, vector<8x32xf32> -> vector<8x32xf32>
    %c0_12 = arith.constant 0 : index
    %c0_13 = arith.constant 0 : index
    %c0_14 = arith.constant 0 : index
    %12 = vector.load %arg7[%c0_12, %c0_13, %c0_14] : memref<1x1x32xf32, #tpu.memory_space<vmem>>, vector<1x1x32xf32>
    %13 = vector.shape_cast %12 : vector<1x1x32xf32> to vector<1x32xf32>
    %14 = vector.broadcast %13 : vector<1x32xf32> to vector<8x32xf32>
    %15 = arith.addf %11, %14 : vector<8x32xf32>
    %c0_15 = arith.constant 0 : index
    %c0_16 = arith.constant 0 : index
    %c0_17 = arith.constant 0 : index
    %16 = vector.load %arg8[%c0_15, %c0_16, %c0_17] : memref<1x128x32xbf16, #tpu.memory_space<vmem>>, vector<1x128x32xbf16>
    %17 = vector.shape_cast %16 : vector<1x128x32xbf16> to vector<128x32xbf16>
    %cst_18 = arith.constant dense<0.000000e+00> : vector<8x32xf32>
    %18 = tpu.matmul %1, %17, %cst_18 {dimension_numbers = #tpu.dot_dimension_numbers<[1], [0], [0], [1], [0, 0, 1, 1], [], []>} : vector<8x128xbf16>, vector<128x32xbf16>, vector<8x32xf32> -> vector<8x32xf32>
    %c0_19 = arith.constant 0 : index
    %c0_20 = arith.constant 0 : index
    %c0_21 = arith.constant 0 : index
    %19 = vector.load %arg9[%c0_19, %c0_20, %c0_21] : memref<1x1x32xf32, #tpu.memory_space<vmem>>, vector<1x1x32xf32>
    %20 = vector.shape_cast %19 : vector<1x1x32xf32> to vector<1x32xf32>
    %21 = vector.broadcast %20 : vector<1x32xf32> to vector<8x32xf32>
    %22 = arith.addf %18, %21 : vector<8x32xf32>
    %23 = arith.truncf %8 : vector<8x32xf32> to vector<8x32xbf16>
    %24 = arith.truncf %15 : vector<8x32xf32> to vector<8x32xbf16>
    %cst_22 = arith.constant dense<0.000000e+00> : vector<8x8xf32>
    %25 = tpu.matmul %23, %24, %cst_22 {dimension_numbers = #tpu.dot_dimension_numbers<[1], [1], [0], [0], [0, 0, 1, 0], [], []>} : vector<8x32xbf16>, vector<8x32xbf16>, vector<8x8xf32> -> vector<8x8xf32>
    %cst_23 = arith.constant 0.176776692 : f32
    %26 = vector.broadcast %cst_23 : f32 to vector<8x8xf32>
    %27 = arith.mulf %25, %26 : vector<8x8xf32>
    %c0_24 = arith.constant 0 : index
    %c0_25 = arith.constant 0 : index
    %c0_26 = arith.constant 0 : index
    %28 = vector.load %arg3[%c0_24, %c0_25, %c0_26] : memref<1x1x8xf32, #tpu.memory_space<vmem>>, vector<1x1x8xf32>
    %29 = vector.shape_cast %28 : vector<1x1x8xf32> to vector<1x8xf32>
    %30 = vector.broadcast %29 : vector<1x8xf32> to vector<8x8xf32>
    %31 = arith.addf %27, %30 : vector<8x8xf32>
    %cst_27 = arith.constant dense<0xFF800000> : vector<8xf32>
    %32 = vector.multi_reduction <maximumf>, %31, %cst_27 [1] : vector<8x8xf32> to vector<8xf32>
    %33 = vector.shape_cast %32 : vector<8xf32> to vector<8x1xf32>
    %34 = vector.broadcast %33 : vector<8x1xf32> to vector<8x8xf32>
    %35 = arith.subf %31, %34 : vector<8x8xf32>
    %36 = math.exp %35 : vector<8x8xf32>
    %cst_28 = arith.constant dense<0.000000e+00> : vector<8xf32>
    %37 = vector.multi_reduction <add>, %36, %cst_28 [1] : vector<8x8xf32> to vector<8xf32>
    %38 = vector.shape_cast %37 : vector<8xf32> to vector<8x1xf32>
    %39 = tpu.reciprocal %38 {approx = true} : vector<8x1xf32> -> vector<8x1xf32>
    %40 = vector.broadcast %39 : vector<8x1xf32> to vector<8x8xf32>
    %41 = arith.mulf %36, %40 : vector<8x8xf32>
    %42 = arith.truncf %41 : vector<8x8xf32> to vector<8x8xbf16>
    %43 = arith.truncf %22 : vector<8x32xf32> to vector<8x32xbf16>
    %cst_29 = arith.constant dense<0.000000e+00> : vector<8x32xf32>
    %44 = tpu.matmul %42, %43, %cst_29 {dimension_numbers = #tpu.dot_dimension_numbers<[1], [0], [0], [1], [0, 0, 1, 1], [], []>} : vector<8x8xbf16>, vector<8x32xbf16>, vector<8x32xf32> -> vector<8x32xf32>
    %c0_i32 = arith.constant 0 : i32
    %45 = arith.cmpi eq, %arg1, %c0_i32 : i32
    %46 = arith.extui %45 : i1 to i32
    %c0_i32_30 = arith.constant 0 : i32
    %47 = arith.cmpi ne, %46, %c0_i32_30 : i32
    scf.if %47 {
      %cst_40 = arith.constant 0.000000e+00 : f32
      %58 = vector.broadcast %cst_40 : f32 to vector<8x128xf32>
      %c0_41 = arith.constant 0 : index
      %c0_42 = arith.constant 0 : index
      %59 = vector.load %arg13[%c0_41, %c0_42] : memref<8x128xf32, #tpu.memory_space<vmem>>, vector<8x128xf32>
      tpu.vector_store %arg13[%c0_41, %c0_42], %58 {strides = array<i32>} : memref<8x128xf32, #tpu.memory_space<vmem>>, vector<8x128xf32>,
    } else {
    }
    %c0_31 = arith.constant 0 : index
    %c0_32 = arith.constant 0 : index
    %48 = vector.load %arg13[%c0_31, %c0_32] : memref<8x128xf32, #tpu.memory_space<vmem>>, vector<8x128xf32>
    %49 = arith.truncf %44 : vector<8x32xf32> to vector<8x32xbf16>
    %c0_33 = arith.constant 0 : index
    %c0_34 = arith.constant 0 : index
    %c0_35 = arith.constant 0 : index
    %50 = vector.load %arg10[%c0_33, %c0_34, %c0_35] : memref<1x32x128xbf16, #tpu.memory_space<vmem>>, vector<1x32x128xbf16>
    %51 = vector.shape_cast %50 : vector<1x32x128xbf16> to vector<32x128xbf16>
    %cst_36 = arith.constant dense<0.000000e+00> : vector<8x128xf32>
    %52 = tpu.matmul %49, %51, %cst_36 {dimension_numbers = #tpu.dot_dimension_numbers<[1], [0], [0], [1], [0, 0, 1, 1], [], []>} : vector<8x32xbf16>, vector<32x128xbf16>, vector<8x128xf32> -> vector<8x128xf32>
    %53 = arith.addf %48, %52 : vector<8x128xf32>
    %c0_37 = arith.constant 0 : index
    %c0_38 = arith.constant 0 : index
    %54 = vector.load %arg13[%c0_37, %c0_38] : memref<8x128xf32, #tpu.memory_space<vmem>>, vector<8x128xf32>
    tpu.vector_store %arg13[%c0_37, %c0_38], %53 {strides = array<i32>} : memref<8x128xf32, #tpu.memory_space<vmem>>, vector<8x128xf32>,
    %c3_i32 = arith.constant 3 : i32
    %55 = arith.cmpi eq, %arg1, %c3_i32 : i32
    %56 = arith.extui %55 : i1 to i32
    %c0_i32_39 = arith.constant 0 : i32
    %57 = arith.cmpi ne, %56, %c0_i32_39 : i32
    scf.if %57 {
      %c0_40 = arith.constant 0 : index
      %c0_41 = arith.constant 0 : index
      %58 = vector.load %arg13[%c0_40, %c0_41] : memref<8x128xf32, #tpu.memory_space<vmem>>, vector<8x128xf32>
      %c0_42 = arith.constant 0 : index
      %c0_43 = arith.constant 0 : index
      %59 = vector.load %arg11[%c0_42, %c0_43] : memref<1x128xf32, #tpu.memory_space<vmem>>, vector<1x128xf32>
      %60 = vector.broadcast %59 : vector<1x128xf32> to vector<8x128xf32>
      %61 = arith.addf %58, %60 : vector<8x128xf32>
      %62 = arith.truncf %61 : vector<8x128xf32> to vector<8x128xbf16>
      %c0_44 = arith.constant 0 : index
      %c0_45 = arith.constant 0 : index
      %c0_46 = arith.constant 0 : index
      %63 = vector.load %arg12[%c0_44, %c0_45, %c0_46] : memref<1x8x128xbf16, #tpu.memory_space<vmem>>, vector<1x8x128xbf16>
      %64 = vector.shape_cast %63 : vector<1x8x128xbf16> to vector<8x128xbf16>
      %65 = vector.shape_cast %62 : vector<8x128xbf16> to vector<1x8x128xbf16>
      tpu.vector_store %arg12[%c0_44, %c0_45, %c0_46], %65 {strides = array<i32>} : memref<1x8x128xbf16, #tpu.memory_space<vmem>>, vector<1x8x128xbf16>,
    } else {
    }
    return
  }
  func.func @transform_0(%arg0: i32, %arg1: i32) -> (i32, i32, i32) {
    %c0_i32 = arith.constant 0 : i32
    %c0_i32_0 = arith.constant 0 : i32
    %c0_i32_1 = arith.constant 0 : i32
    return %arg0, %c0_i32, %c0_i32_0 : i32, i32, i32
  }
  func.func @transform_1(%arg0: i32, %arg1: i32) -> (i32, i32, i32) {
    %c0_i32 = arith.constant 0 : i32
    %c0_i32_0 = arith.constant 0 : i32
    %c0_i32_1 = arith.constant 0 : i32
    return %arg0, %c0_i32, %c0_i32_0 : i32, i32, i32
  }
  func.func @transform_2(%arg0: i32, %arg1: i32) -> (i32, i32, i32) {
    %c0_i32 = arith.constant 0 : i32
    %c0_i32_0 = arith.constant 0 : i32
    %c0_i32_1 = arith.constant 0 : i32
    return %arg1, %c0_i32, %c0_i32_0 : i32, i32, i32
  }
  func.func @transform_3(%arg0: i32, %arg1: i32) -> (i32, i32, i32) {
    %c0_i32 = arith.constant 0 : i32
    %c0_i32_0 = arith.constant 0 : i32
    %c0_i32_1 = arith.constant 0 : i32
    return %arg1, %c0_i32, %c0_i32_0 : i32, i32, i32
  }
  func.func @transform_4(%arg0: i32, %arg1: i32) -> (i32, i32, i32) {
    %c0_i32 = arith.constant 0 : i32
    %c0_i32_0 = arith.constant 0 : i32
    %c0_i32_1 = arith.constant 0 : i32
    return %arg1, %c0_i32, %c0_i32_0 : i32, i32, i32
  }
  func.func @transform_5(%arg0: i32, %arg1: i32) -> (i32, i32, i32) {
    %c0_i32 = arith.constant 0 : i32
    %c0_i32_0 = arith.constant 0 : i32
    %c0_i32_1 = arith.constant 0 : i32
    return %arg1, %c0_i32, %c0_i32_0 : i32, i32, i32
  }
  func.func @transform_6(%arg0: i32, %arg1: i32) -> (i32, i32, i32) {
    %c0_i32 = arith.constant 0 : i32
    %c0_i32_0 = arith.constant 0 : i32
    %c0_i32_1 = arith.constant 0 : i32
    return %arg1, %c0_i32, %c0_i32_0 : i32, i32, i32
  }
  func.func @transform_7(%arg0: i32, %arg1: i32) -> (i32, i32, i32) {
    %c0_i32 = arith.constant 0 : i32
    %c0_i32_0 = arith.constant 0 : i32
    %c0_i32_1 = arith.constant 0 : i32
    return %arg1, %c0_i32, %c0_i32_0 : i32, i32, i32
  }
  func.func @transform_8(%arg0: i32, %arg1: i32) -> (i32, i32, i32) {
    %c0_i32 = arith.constant 0 : i32
    %c0_i32_0 = arith.constant 0 : i32
    %c0_i32_1 = arith.constant 0 : i32
    return %arg1, %c0_i32, %c0_i32_0 : i32, i32, i32
  }
  func.func @transform_9(%arg0: i32, %arg1: i32) -> (i32, i32) {
    %c0_i32 = arith.constant 0 : i32
    %c0_i32_0 = arith.constant 0 : i32
    %c0_i32_1 = arith.constant 0 : i32
    return %c0_i32, %c0_i32_0 : i32, i32
  }
  func.func @transform_10(%arg0: i32, %arg1: i32) -> (i32, i32, i32) {
    %c0_i32 = arith.constant 0 : i32
    %c0_i32_0 = arith.constant 0 : i32
    %c0_i32_1 = arith.constant 0 : i32
    return %arg0, %c0_i32, %c0_i32_0 : i32, i32, i32
  }
}

module attributes {stable_mosaic.version = 11 : i64} {
  func.func @_linear_kernel(%arg0: i32, %arg1: i32, %arg2: i32, %arg3: memref<16x32xbf16, #tpu.memory_space<vmem>>, %arg4: memref<32x128xbf16, #tpu.memory_space<vmem>>, %arg5: memref<1x128xf32, #tpu.memory_space<vmem>>, %arg6: memref<16x128xf32, #tpu.memory_space<vmem>>, %arg7: memref<16x128xf32, #tpu.memory_space<vmem>>) attributes {dimension_semantics = [#tpu.dimension_semantics<parallel>, #tpu.dimension_semantics<parallel>, #tpu.dimension_semantics<arbitrary>], iteration_bounds = array<i64: 1, 1, 1>, scalar_prefetch = 0 : i64, scratch_operands = 1 : i64, tpu.core_type = #tpu.core_type<tc>, window_params = [{transform_indices = @transform_0, window_bounds = array<i64: 16, 32>}, {transform_indices = @transform_1, window_bounds = array<i64: 32, 128>}, {transform_indices = @transform_2, window_bounds = array<i64: 1, 128>}, {transform_indices = @transform_3, window_bounds = array<i64: 16, 128>}]} {
    %c0_i32 = arith.constant 0 : i32
    %0 = arith.cmpi eq, %arg2, %c0_i32 : i32
    %1 = arith.extui %0 : i1 to i32
    %c0_i32_0 = arith.constant 0 : i32
    %2 = arith.cmpi ne, %1, %c0_i32_0 : i32
    scf.if %2 {
      %cst_10 = arith.constant 0.000000e+00 : f32
      %12 = vector.broadcast %cst_10 : f32 to vector<16x128xf32>
      %c0_11 = arith.constant 0 : index
      %c0_12 = arith.constant 0 : index
      %13 = vector.load %arg7[%c0_11, %c0_12] : memref<16x128xf32, #tpu.memory_space<vmem>>, vector<16x128xf32>
      tpu.vector_store %arg7[%c0_11, %c0_12], %12 {strides = array<i32>} : memref<16x128xf32, #tpu.memory_space<vmem>>, vector<16x128xf32>,
    } else {
    }
    %c0 = arith.constant 0 : index
    %c0_1 = arith.constant 0 : index
    %3 = vector.load %arg7[%c0, %c0_1] : memref<16x128xf32, #tpu.memory_space<vmem>>, vector<16x128xf32>
    %c0_2 = arith.constant 0 : index
    %c0_3 = arith.constant 0 : index
    %4 = vector.load %arg3[%c0_2, %c0_3] : memref<16x32xbf16, #tpu.memory_space<vmem>>, vector<16x32xbf16>
    %c0_4 = arith.constant 0 : index
    %c0_5 = arith.constant 0 : index
    %5 = vector.load %arg4[%c0_4, %c0_5] : memref<32x128xbf16, #tpu.memory_space<vmem>>, vector<32x128xbf16>
    %cst = arith.constant dense<0.000000e+00> : vector<16x128xf32>
    %6 = tpu.matmul %4, %5, %cst {dimension_numbers = #tpu.dot_dimension_numbers<[1], [0], [0], [1], [0, 0, 1, 1], [], []>} : vector<16x32xbf16>, vector<32x128xbf16>, vector<16x128xf32> -> vector<16x128xf32>
    %7 = arith.addf %3, %6 : vector<16x128xf32>
    %c0_6 = arith.constant 0 : index
    %c0_7 = arith.constant 0 : index
    %8 = vector.load %arg7[%c0_6, %c0_7] : memref<16x128xf32, #tpu.memory_space<vmem>>, vector<16x128xf32>
    tpu.vector_store %arg7[%c0_6, %c0_7], %7 {strides = array<i32>} : memref<16x128xf32, #tpu.memory_space<vmem>>, vector<16x128xf32>,
    %c0_i32_8 = arith.constant 0 : i32
    %9 = arith.cmpi eq, %arg2, %c0_i32_8 : i32
    %10 = arith.extui %9 : i1 to i32
    %c0_i32_9 = arith.constant 0 : i32
    %11 = arith.cmpi ne, %10, %c0_i32_9 : i32
    scf.if %11 {
      %c0_10 = arith.constant 0 : index
      %c0_11 = arith.constant 0 : index
      %12 = vector.load %arg7[%c0_10, %c0_11] : memref<16x128xf32, #tpu.memory_space<vmem>>, vector<16x128xf32>
      %c0_12 = arith.constant 0 : index
      %c0_13 = arith.constant 0 : index
      %13 = vector.load %arg5[%c0_12, %c0_13] : memref<1x128xf32, #tpu.memory_space<vmem>>, vector<1x128xf32>
      %14 = vector.broadcast %13 : vector<1x128xf32> to vector<16x128xf32>
      %15 = arith.addf %12, %14 : vector<16x128xf32>
      %c0_14 = arith.constant 0 : index
      %c0_15 = arith.constant 0 : index
      %16 = vector.load %arg6[%c0_14, %c0_15] : memref<16x128xf32, #tpu.memory_space<vmem>>, vector<16x128xf32>
      tpu.vector_store %arg6[%c0_14, %c0_15], %15 {strides = array<i32>} : memref<16x128xf32, #tpu.memory_space<vmem>>, vector<16x128xf32>,
    } else {
    }
    return
  }
  func.func @transform_0(%arg0: i32, %arg1: i32, %arg2: i32) -> (i32, i32) {
    %c0_i32 = arith.constant 0 : i32
    return %arg0, %arg2 : i32, i32
  }
  func.func @transform_1(%arg0: i32, %arg1: i32, %arg2: i32) -> (i32, i32) {
    %c0_i32 = arith.constant 0 : i32
    return %arg2, %arg1 : i32, i32
  }
  func.func @transform_2(%arg0: i32, %arg1: i32, %arg2: i32) -> (i32, i32) {
    %c0_i32 = arith.constant 0 : i32
    %c0_i32_0 = arith.constant 0 : i32
    return %c0_i32, %arg1 : i32, i32
  }
  func.func @transform_3(%arg0: i32, %arg1: i32, %arg2: i32) -> (i32, i32) {
    %c0_i32 = arith.constant 0 : i32
    return %arg0, %arg1 : i32, i32
  }
}

module attributes {stable_mosaic.version = 11 : i64} {
  func.func @_add_ln_kernel(%arg0: i32, %arg1: memref<16x128xbf16, #tpu.memory_space<vmem>>, %arg2: memref<16x128xbf16, #tpu.memory_space<vmem>>, %arg3: memref<1x128xf32, #tpu.memory_space<vmem>>, %arg4: memref<1x128xf32, #tpu.memory_space<vmem>>, %arg5: memref<16x128xbf16, #tpu.memory_space<vmem>>) attributes {dimension_semantics = [#tpu.dimension_semantics<parallel>], iteration_bounds = array<i64: 1>, scalar_prefetch = 0 : i64, scratch_operands = 0 : i64, tpu.core_type = #tpu.core_type<tc>, window_params = [{transform_indices = @transform_0, window_bounds = array<i64: 16, 128>}, {transform_indices = @transform_1, window_bounds = array<i64: 16, 128>}, {pipeline_mode = #tpu.pipeline_mode<synchronous>, transform_indices = @transform_2, window_bounds = array<i64: 1, 128>}, {pipeline_mode = #tpu.pipeline_mode<synchronous>, transform_indices = @transform_3, window_bounds = array<i64: 1, 128>}, {transform_indices = @transform_4, window_bounds = array<i64: 16, 128>}]} {
    %c0 = arith.constant 0 : index
    %c0_0 = arith.constant 0 : index
    %0 = vector.load %arg1[%c0, %c0_0] : memref<16x128xbf16, #tpu.memory_space<vmem>>, vector<16x128xbf16>
    %1 = arith.extf %0 : vector<16x128xbf16> to vector<16x128xf32>
    %c0_1 = arith.constant 0 : index
    %c0_2 = arith.constant 0 : index
    %2 = vector.load %arg2[%c0_1, %c0_2] : memref<16x128xbf16, #tpu.memory_space<vmem>>, vector<16x128xbf16>
    %3 = arith.extf %2 : vector<16x128xbf16> to vector<16x128xf32>
    %4 = arith.addf %1, %3 : vector<16x128xf32>
    %cst = arith.constant dense<0.000000e+00> : vector<16xf32>
    %5 = vector.multi_reduction <add>, %4, %cst [1] : vector<16x128xf32> to vector<16xf32>
    %6 = vector.shape_cast %5 : vector<16xf32> to vector<16x1xf32>
    %cst_3 = arith.constant 1.280000e+02 : f32
    %7 = vector.broadcast %cst_3 : f32 to vector<16x1xf32>
    %8 = arith.divf %6, %7 : vector<16x1xf32>
    %9 = vector.broadcast %8 : vector<16x1xf32> to vector<16x128xf32>
    %10 = arith.subf %4, %9 : vector<16x128xf32>
    %11 = arith.mulf %10, %10 : vector<16x128xf32>
    %cst_4 = arith.constant dense<0.000000e+00> : vector<16xf32>
    %12 = vector.multi_reduction <add>, %11, %cst_4 [1] : vector<16x128xf32> to vector<16xf32>
    %13 = vector.shape_cast %12 : vector<16xf32> to vector<16x1xf32>
    %cst_5 = arith.constant 1.280000e+02 : f32
    %14 = vector.broadcast %cst_5 : f32 to vector<16x1xf32>
    %15 = arith.divf %13, %14 : vector<16x1xf32>
    %cst_6 = arith.constant 9.99999974E-6 : f32
    %16 = vector.broadcast %cst_6 : f32 to vector<16x1xf32>
    %17 = arith.addf %15, %16 : vector<16x1xf32>
    %18 = math.rsqrt %17 : vector<16x1xf32>
    %19 = vector.broadcast %18 : vector<16x1xf32> to vector<16x128xf32>
    %20 = arith.mulf %10, %19 : vector<16x128xf32>
    %c0_7 = arith.constant 0 : index
    %c0_8 = arith.constant 0 : index
    %21 = vector.load %arg3[%c0_7, %c0_8] : memref<1x128xf32, #tpu.memory_space<vmem>>, vector<1x128xf32>
    %22 = vector.broadcast %21 : vector<1x128xf32> to vector<16x128xf32>
    %23 = arith.mulf %20, %22 : vector<16x128xf32>
    %c0_9 = arith.constant 0 : index
    %c0_10 = arith.constant 0 : index
    %24 = vector.load %arg4[%c0_9, %c0_10] : memref<1x128xf32, #tpu.memory_space<vmem>>, vector<1x128xf32>
    %25 = vector.broadcast %24 : vector<1x128xf32> to vector<16x128xf32>
    %26 = arith.addf %23, %25 : vector<16x128xf32>
    %27 = arith.truncf %26 : vector<16x128xf32> to vector<16x128xbf16>
    %c0_11 = arith.constant 0 : index
    %c0_12 = arith.constant 0 : index
    %28 = vector.load %arg5[%c0_11, %c0_12] : memref<16x128xbf16, #tpu.memory_space<vmem>>, vector<16x128xbf16>
    tpu.vector_store %arg5[%c0_11, %c0_12], %27 {strides = array<i32>} : memref<16x128xbf16, #tpu.memory_space<vmem>>, vector<16x128xbf16>,
    return
  }
  func.func @transform_0(%arg0: i32) -> (i32, i32) {
    %c0_i32 = arith.constant 0 : i32
    %c0_i32_0 = arith.constant 0 : i32
    return %arg0, %c0_i32 : i32, i32
  }
  func.func @transform_1(%arg0: i32) -> (i32, i32) {
    %c0_i32 = arith.constant 0 : i32
    %c0_i32_0 = arith.constant 0 : i32
    return %arg0, %c0_i32 : i32, i32
  }
  func.func @transform_2(%arg0: i32) -> (i32, i32) {
    %c0_i32 = arith.constant 0 : i32
    %c0_i32_0 = arith.constant 0 : i32
    %c0_i32_1 = arith.constant 0 : i32
    return %c0_i32, %c0_i32_0 : i32, i32
  }
  func.func @transform_3(%arg0: i32) -> (i32, i32) {
    %c0_i32 = arith.constant 0 : i32
    %c0_i32_0 = arith.constant 0 : i32
    %c0_i32_1 = arith.constant 0 : i32
    return %c0_i32, %c0_i32_0 : i32, i32
  }
  func.func @transform_4(%arg0: i32) -> (i32, i32) {
    %c0_i32 = arith.constant 0 : i32
    %c0_i32_0 = arith.constant 0 : i32
    return %arg0, %c0_i32 : i32, i32
  }
}

module attributes {stable_mosaic.version = 11 : i64} {
  func.func @_add_ln_kernel(%arg0: i32, %arg1: memref<16x128xbf16, #tpu.memory_space<vmem>>, %arg2: memref<16x128xbf16, #tpu.memory_space<vmem>>, %arg3: memref<1x128xf32, #tpu.memory_space<vmem>>, %arg4: memref<1x128xf32, #tpu.memory_space<vmem>>, %arg5: memref<16x128xbf16, #tpu.memory_space<vmem>>) attributes {dimension_semantics = [#tpu.dimension_semantics<parallel>], iteration_bounds = array<i64: 1>, scalar_prefetch = 0 : i64, scratch_operands = 0 : i64, tpu.core_type = #tpu.core_type<tc>, window_params = [{transform_indices = @transform_0, window_bounds = array<i64: 16, 128>}, {transform_indices = @transform_1, window_bounds = array<i64: 16, 128>}, {pipeline_mode = #tpu.pipeline_mode<synchronous>, transform_indices = @transform_2, window_bounds = array<i64: 1, 128>}, {pipeline_mode = #tpu.pipeline_mode<synchronous>, transform_indices = @transform_3, window_bounds = array<i64: 1, 128>}, {transform_indices = @transform_4, window_bounds = array<i64: 16, 128>}]} {
    %c0 = arith.constant 0 : index
    %c0_0 = arith.constant 0 : index
    %0 = vector.load %arg1[%c0, %c0_0] : memref<16x128xbf16, #tpu.memory_space<vmem>>, vector<16x128xbf16>
    %1 = arith.extf %0 : vector<16x128xbf16> to vector<16x128xf32>
    %c0_1 = arith.constant 0 : index
    %c0_2 = arith.constant 0 : index
    %2 = vector.load %arg2[%c0_1, %c0_2] : memref<16x128xbf16, #tpu.memory_space<vmem>>, vector<16x128xbf16>
    %3 = arith.extf %2 : vector<16x128xbf16> to vector<16x128xf32>
    %4 = arith.addf %1, %3 : vector<16x128xf32>
    %cst = arith.constant dense<0.000000e+00> : vector<16xf32>
    %5 = vector.multi_reduction <add>, %4, %cst [1] : vector<16x128xf32> to vector<16xf32>
    %6 = vector.shape_cast %5 : vector<16xf32> to vector<16x1xf32>
    %cst_3 = arith.constant 1.280000e+02 : f32
    %7 = vector.broadcast %cst_3 : f32 to vector<16x1xf32>
    %8 = arith.divf %6, %7 : vector<16x1xf32>
    %9 = vector.broadcast %8 : vector<16x1xf32> to vector<16x128xf32>
    %10 = arith.subf %4, %9 : vector<16x128xf32>
    %11 = arith.mulf %10, %10 : vector<16x128xf32>
    %cst_4 = arith.constant dense<0.000000e+00> : vector<16xf32>
    %12 = vector.multi_reduction <add>, %11, %cst_4 [1] : vector<16x128xf32> to vector<16xf32>
    %13 = vector.shape_cast %12 : vector<16xf32> to vector<16x1xf32>
    %cst_5 = arith.constant 1.280000e+02 : f32
    %14 = vector.broadcast %cst_5 : f32 to vector<16x1xf32>
    %15 = arith.divf %13, %14 : vector<16x1xf32>
    %cst_6 = arith.constant 9.99999974E-6 : f32
    %16 = vector.broadcast %cst_6 : f32 to vector<16x1xf32>
    %17 = arith.addf %15, %16 : vector<16x1xf32>
    %18 = math.rsqrt %17 : vector<16x1xf32>
    %19 = vector.broadcast %18 : vector<16x1xf32> to vector<16x128xf32>
    %20 = arith.mulf %10, %19 : vector<16x128xf32>
    %c0_7 = arith.constant 0 : index
    %c0_8 = arith.constant 0 : index
    %21 = vector.load %arg3[%c0_7, %c0_8] : memref<1x128xf32, #tpu.memory_space<vmem>>, vector<1x128xf32>
    %22 = vector.broadcast %21 : vector<1x128xf32> to vector<16x128xf32>
    %23 = arith.mulf %20, %22 : vector<16x128xf32>
    %c0_9 = arith.constant 0 : index
    %c0_10 = arith.constant 0 : index
    %24 = vector.load %arg4[%c0_9, %c0_10] : memref<1x128xf32, #tpu.memory_space<vmem>>, vector<1x128xf32>
    %25 = vector.broadcast %24 : vector<1x128xf32> to vector<16x128xf32>
    %26 = arith.addf %23, %25 : vector<16x128xf32>
    %27 = arith.truncf %26 : vector<16x128xf32> to vector<16x128xbf16>
    %c0_11 = arith.constant 0 : index
    %c0_12 = arith.constant 0 : index
    %28 = vector.load %arg5[%c0_11, %c0_12] : memref<16x128xbf16, #tpu.memory_space<vmem>>, vector<16x128xbf16>
    tpu.vector_store %arg5[%c0_11, %c0_12], %27 {strides = array<i32>} : memref<16x128xbf16, #tpu.memory_space<vmem>>, vector<16x128xbf16>,
    return
  }
  func.func @transform_0(%arg0: i32) -> (i32, i32) {
    %c0_i32 = arith.constant 0 : i32
    %c0_i32_0 = arith.constant 0 : i32
    return %arg0, %c0_i32 : i32, i32
  }
  func.func @transform_1(%arg0: i32) -> (i32, i32) {
    %c0_i32 = arith.constant 0 : i32
    %c0_i32_0 = arith.constant 0 : i32
    return %arg0, %c0_i32 : i32, i32
  }
  func.func @transform_2(%arg0: i32) -> (i32, i32) {
    %c0_i32 = arith.constant 0 : i32
    %c0_i32_0 = arith.constant 0 : i32
    %c0_i32_1 = arith.constant 0 : i32
    return %c0_i32, %c0_i32_0 : i32, i32
  }
  func.func @transform_3(%arg0: i32) -> (i32, i32) {
    %c0_i32 = arith.constant 0 : i32
    %c0_i32_0 = arith.constant 0 : i32
    %c0_i32_1 = arith.constant 0 : i32
    return %c0_i32, %c0_i32_0 : i32, i32
  }
  func.func @transform_4(%arg0: i32) -> (i32, i32) {
    %c0_i32 = arith.constant 0 : i32
    %c0_i32_0 = arith.constant 0 : i32
    return %arg0, %c0_i32 : i32, i32
  }
}

module attributes {stable_mosaic.version = 11 : i64} {
  func.func @_linear_kernel(%arg0: i32, %arg1: i32, %arg2: i32, %arg3: memref<16x128xbf16, #tpu.memory_space<vmem>>, %arg4: memref<128x4xbf16, #tpu.memory_space<vmem>>, %arg5: memref<1x4xf32, #tpu.memory_space<vmem>>, %arg6: memref<16x4xf32, #tpu.memory_space<vmem>>, %arg7: memref<16x4xf32, #tpu.memory_space<vmem>>) attributes {dimension_semantics = [#tpu.dimension_semantics<parallel>, #tpu.dimension_semantics<parallel>, #tpu.dimension_semantics<arbitrary>], iteration_bounds = array<i64: 1, 1, 1>, scalar_prefetch = 0 : i64, scratch_operands = 1 : i64, tpu.core_type = #tpu.core_type<tc>, window_params = [{transform_indices = @transform_0, window_bounds = array<i64: 16, 128>}, {transform_indices = @transform_1, window_bounds = array<i64: 128, 4>}, {transform_indices = @transform_2, window_bounds = array<i64: 1, 4>}, {transform_indices = @transform_3, window_bounds = array<i64: 16, 4>}]} {
    %c0_i32 = arith.constant 0 : i32
    %0 = arith.cmpi eq, %arg2, %c0_i32 : i32
    %1 = arith.extui %0 : i1 to i32
    %c0_i32_0 = arith.constant 0 : i32
    %2 = arith.cmpi ne, %1, %c0_i32_0 : i32
    scf.if %2 {
      %cst_10 = arith.constant 0.000000e+00 : f32
      %12 = vector.broadcast %cst_10 : f32 to vector<16x4xf32>
      %c0_11 = arith.constant 0 : index
      %c0_12 = arith.constant 0 : index
      %13 = vector.load %arg7[%c0_11, %c0_12] : memref<16x4xf32, #tpu.memory_space<vmem>>, vector<16x4xf32>
      tpu.vector_store %arg7[%c0_11, %c0_12], %12 {strides = array<i32>} : memref<16x4xf32, #tpu.memory_space<vmem>>, vector<16x4xf32>,
    } else {
    }
    %c0 = arith.constant 0 : index
    %c0_1 = arith.constant 0 : index
    %3 = vector.load %arg7[%c0, %c0_1] : memref<16x4xf32, #tpu.memory_space<vmem>>, vector<16x4xf32>
    %c0_2 = arith.constant 0 : index
    %c0_3 = arith.constant 0 : index
    %4 = vector.load %arg3[%c0_2, %c0_3] : memref<16x128xbf16, #tpu.memory_space<vmem>>, vector<16x128xbf16>
    %c0_4 = arith.constant 0 : index
    %c0_5 = arith.constant 0 : index
    %5 = vector.load %arg4[%c0_4, %c0_5] : memref<128x4xbf16, #tpu.memory_space<vmem>>, vector<128x4xbf16>
    %cst = arith.constant dense<0.000000e+00> : vector<16x4xf32>
    %6 = tpu.matmul %4, %5, %cst {dimension_numbers = #tpu.dot_dimension_numbers<[1], [0], [0], [1], [0, 0, 1, 1], [], []>} : vector<16x128xbf16>, vector<128x4xbf16>, vector<16x4xf32> -> vector<16x4xf32>
    %7 = arith.addf %3, %6 : vector<16x4xf32>
    %c0_6 = arith.constant 0 : index
    %c0_7 = arith.constant 0 : index
    %8 = vector.load %arg7[%c0_6, %c0_7] : memref<16x4xf32, #tpu.memory_space<vmem>>, vector<16x4xf32>
    tpu.vector_store %arg7[%c0_6, %c0_7], %7 {strides = array<i32>} : memref<16x4xf32, #tpu.memory_space<vmem>>, vector<16x4xf32>,
    %c0_i32_8 = arith.constant 0 : i32
    %9 = arith.cmpi eq, %arg2, %c0_i32_8 : i32
    %10 = arith.extui %9 : i1 to i32
    %c0_i32_9 = arith.constant 0 : i32
    %11 = arith.cmpi ne, %10, %c0_i32_9 : i32
    scf.if %11 {
      %c0_10 = arith.constant 0 : index
      %c0_11 = arith.constant 0 : index
      %12 = vector.load %arg7[%c0_10, %c0_11] : memref<16x4xf32, #tpu.memory_space<vmem>>, vector<16x4xf32>
      %c0_12 = arith.constant 0 : index
      %c0_13 = arith.constant 0 : index
      %13 = vector.load %arg5[%c0_12, %c0_13] : memref<1x4xf32, #tpu.memory_space<vmem>>, vector<1x4xf32>
      %14 = vector.broadcast %13 : vector<1x4xf32> to vector<16x4xf32>
      %15 = arith.addf %12, %14 : vector<16x4xf32>
      %c0_14 = arith.constant 0 : index
      %c0_15 = arith.constant 0 : index
      %16 = vector.load %arg6[%c0_14, %c0_15] : memref<16x4xf32, #tpu.memory_space<vmem>>, vector<16x4xf32>
      tpu.vector_store %arg6[%c0_14, %c0_15], %15 {strides = array<i32>} : memref<16x4xf32, #tpu.memory_space<vmem>>, vector<16x4xf32>,
    } else {
    }
    return
  }
  func.func @transform_0(%arg0: i32, %arg1: i32, %arg2: i32) -> (i32, i32) {
    %c0_i32 = arith.constant 0 : i32
    return %arg0, %arg2 : i32, i32
  }
  func.func @transform_1(%arg0: i32, %arg1: i32, %arg2: i32) -> (i32, i32) {
    %c0_i32 = arith.constant 0 : i32
    return %arg2, %arg1 : i32, i32
  }
  func.func @transform_2(%arg0: i32, %arg1: i32, %arg2: i32) -> (i32, i32) {
    %c0_i32 = arith.constant 0 : i32
    %c0_i32_0 = arith.constant 0 : i32
    return %c0_i32, %arg1 : i32, i32
  }
  func.func @transform_3(%arg0: i32, %arg1: i32, %arg2: i32) -> (i32, i32) {
    %c0_i32 = arith.constant 0 : i32
    return %arg0, %arg1 : i32, i32
  }
}

module attributes {stable_mosaic.version = 11 : i64} {
  func.func @_ff_kernel(%arg0: i32, %arg1: i32, %arg2: memref<16x128xbf16, #tpu.memory_space<vmem>>, %arg3: memref<128x256xbf16, #tpu.memory_space<vmem>>, %arg4: memref<1x256xf32, #tpu.memory_space<vmem>>, %arg5: memref<256x128xbf16, #tpu.memory_space<vmem>>, %arg6: memref<1x128xf32, #tpu.memory_space<vmem>>, %arg7: memref<16x128xbf16, #tpu.memory_space<vmem>>, %arg8: memref<16x128xf32, #tpu.memory_space<vmem>>) attributes {dimension_semantics = [#tpu.dimension_semantics<parallel>, #tpu.dimension_semantics<arbitrary>], iteration_bounds = array<i64: 1, 1>, scalar_prefetch = 0 : i64, scratch_operands = 1 : i64, tpu.core_type = #tpu.core_type<tc>, window_params = [{transform_indices = @transform_0, window_bounds = array<i64: 16, 128>}, {transform_indices = @transform_1, window_bounds = array<i64: 128, 256>}, {transform_indices = @transform_2, window_bounds = array<i64: 1, 256>}, {transform_indices = @transform_3, window_bounds = array<i64: 256, 128>}, {pipeline_mode = #tpu.pipeline_mode<synchronous>, transform_indices = @transform_4, window_bounds = array<i64: 1, 128>}, {transform_indices = @transform_5, window_bounds = array<i64: 16, 128>}]} {
    %c0_i32 = arith.constant 0 : i32
    %0 = arith.cmpi eq, %arg1, %c0_i32 : i32
    %1 = arith.extui %0 : i1 to i32
    %c0_i32_0 = arith.constant 0 : i32
    %2 = arith.cmpi ne, %1, %c0_i32_0 : i32
    scf.if %2 {
      %cst_16 = arith.constant 0.000000e+00 : f32
      %20 = vector.broadcast %cst_16 : f32 to vector<16x128xf32>
      %c0_17 = arith.constant 0 : index
      %c0_18 = arith.constant 0 : index
      %21 = vector.load %arg8[%c0_17, %c0_18] : memref<16x128xf32, #tpu.memory_space<vmem>>, vector<16x128xf32>
      tpu.vector_store %arg8[%c0_17, %c0_18], %20 {strides = array<i32>} : memref<16x128xf32, #tpu.memory_space<vmem>>, vector<16x128xf32>,
    } else {
    }
    %c0 = arith.constant 0 : index
    %c0_1 = arith.constant 0 : index
    %3 = vector.load %arg2[%c0, %c0_1] : memref<16x128xbf16, #tpu.memory_space<vmem>>, vector<16x128xbf16>
    %c0_2 = arith.constant 0 : index
    %c0_3 = arith.constant 0 : index
    %4 = vector.load %arg3[%c0_2, %c0_3] : memref<128x256xbf16, #tpu.memory_space<vmem>>, vector<128x256xbf16>
    %cst = arith.constant dense<0.000000e+00> : vector<16x256xf32>
    %5 = tpu.matmul %3, %4, %cst {dimension_numbers = #tpu.dot_dimension_numbers<[1], [0], [0], [1], [0, 0, 1, 1], [], []>} : vector<16x128xbf16>, vector<128x256xbf16>, vector<16x256xf32> -> vector<16x256xf32>
    %c0_4 = arith.constant 0 : index
    %c0_5 = arith.constant 0 : index
    %6 = vector.load %arg4[%c0_4, %c0_5] : memref<1x256xf32, #tpu.memory_space<vmem>>, vector<1x256xf32>
    %7 = vector.broadcast %6 : vector<1x256xf32> to vector<16x256xf32>
    %8 = arith.addf %5, %7 : vector<16x256xf32>
    %cst_6 = arith.constant 0.000000e+00 : f32
    %9 = vector.broadcast %cst_6 : f32 to vector<16x256xf32>
    %10 = arith.maximumf %8, %9 : vector<16x256xf32>
    %11 = arith.truncf %10 : vector<16x256xf32> to vector<16x256xbf16>
    %c0_7 = arith.constant 0 : index
    %c0_8 = arith.constant 0 : index
    %12 = vector.load %arg8[%c0_7, %c0_8] : memref<16x128xf32, #tpu.memory_space<vmem>>, vector<16x128xf32>
    %c0_9 = arith.constant 0 : index
    %c0_10 = arith.constant 0 : index
    %13 = vector.load %arg5[%c0_9, %c0_10] : memref<256x128xbf16, #tpu.memory_space<vmem>>, vector<256x128xbf16>
    %cst_11 = arith.constant dense<0.000000e+00> : vector<16x128xf32>
    %14 = tpu.matmul %11, %13, %cst_11 {dimension_numbers = #tpu.dot_dimension_numbers<[1], [0], [0], [1], [0, 0, 1, 1], [], []>} : vector<16x256xbf16>, vector<256x128xbf16>, vector<16x128xf32> -> vector<16x128xf32>
    %15 = arith.addf %12, %14 : vector<16x128xf32>
    %c0_12 = arith.constant 0 : index
    %c0_13 = arith.constant 0 : index
    %16 = vector.load %arg8[%c0_12, %c0_13] : memref<16x128xf32, #tpu.memory_space<vmem>>, vector<16x128xf32>
    tpu.vector_store %arg8[%c0_12, %c0_13], %15 {strides = array<i32>} : memref<16x128xf32, #tpu.memory_space<vmem>>, vector<16x128xf32>,
    %c0_i32_14 = arith.constant 0 : i32
    %17 = arith.cmpi eq, %arg1, %c0_i32_14 : i32
    %18 = arith.extui %17 : i1 to i32
    %c0_i32_15 = arith.constant 0 : i32
    %19 = arith.cmpi ne, %18, %c0_i32_15 : i32
    scf.if %19 {
      %c0_16 = arith.constant 0 : index
      %c0_17 = arith.constant 0 : index
      %20 = vector.load %arg8[%c0_16, %c0_17] : memref<16x128xf32, #tpu.memory_space<vmem>>, vector<16x128xf32>
      %c0_18 = arith.constant 0 : index
      %c0_19 = arith.constant 0 : index
      %21 = vector.load %arg6[%c0_18, %c0_19] : memref<1x128xf32, #tpu.memory_space<vmem>>, vector<1x128xf32>
      %22 = vector.broadcast %21 : vector<1x128xf32> to vector<16x128xf32>
      %23 = arith.addf %20, %22 : vector<16x128xf32>
      %24 = arith.truncf %23 : vector<16x128xf32> to vector<16x128xbf16>
      %c0_20 = arith.constant 0 : index
      %c0_21 = arith.constant 0 : index
      %25 = vector.load %arg7[%c0_20, %c0_21] : memref<16x128xbf16, #tpu.memory_space<vmem>>, vector<16x128xbf16>
      tpu.vector_store %arg7[%c0_20, %c0_21], %24 {strides = array<i32>} : memref<16x128xbf16, #tpu.memory_space<vmem>>, vector<16x128xbf16>,
    } else {
    }
    return
  }
  func.func @transform_0(%arg0: i32, %arg1: i32) -> (i32, i32) {
    %c0_i32 = arith.constant 0 : i32
    %c0_i32_0 = arith.constant 0 : i32
    return %arg0, %c0_i32 : i32, i32
  }
  func.func @transform_1(%arg0: i32, %arg1: i32) -> (i32, i32) {
    %c0_i32 = arith.constant 0 : i32
    %c0_i32_0 = arith.constant 0 : i32
    return %c0_i32, %arg1 : i32, i32
  }
  func.func @transform_2(%arg0: i32, %arg1: i32) -> (i32, i32) {
    %c0_i32 = arith.constant 0 : i32
    %c0_i32_0 = arith.constant 0 : i32
    return %c0_i32, %arg1 : i32, i32
  }
  func.func @transform_3(%arg0: i32, %arg1: i32) -> (i32, i32) {
    %c0_i32 = arith.constant 0 : i32
    %c0_i32_0 = arith.constant 0 : i32
    return %arg1, %c0_i32 : i32, i32
  }
  func.func @transform_4(%arg0: i32, %arg1: i32) -> (i32, i32) {
    %c0_i32 = arith.constant 0 : i32
    %c0_i32_0 = arith.constant 0 : i32
    %c0_i32_1 = arith.constant 0 : i32
    return %c0_i32, %c0_i32_0 : i32, i32
  }
  func.func @transform_5(%arg0: i32, %arg1: i32) -> (i32, i32) {
    %c0_i32 = arith.constant 0 : i32
    %c0_i32_0 = arith.constant 0 : i32
    return %arg0, %c0_i32 : i32, i32
  }
}

module attributes {stable_mosaic.version = 11 : i64} {
  func.func @_moe_kernel(%arg0: i32, %arg1: i32, %arg2: i32, %arg3: memref<16x128xbf16, #tpu.memory_space<vmem>>, %arg4: memref<1x128x256xbf16, #tpu.memory_space<vmem>>, %arg5: memref<1x1x256xf32, #tpu.memory_space<vmem>>, %arg6: memref<1x256x128xbf16, #tpu.memory_space<vmem>>, %arg7: memref<1x1x128xf32, #tpu.memory_space<vmem>>, %arg8: memref<1x16x1xf32, #tpu.memory_space<vmem>>, %arg9: memref<16x128xbf16, #tpu.memory_space<vmem>>, %arg10: memref<16x128xf32, #tpu.memory_space<vmem>>) attributes {dimension_semantics = [#tpu.dimension_semantics<parallel>, #tpu.dimension_semantics<arbitrary>, #tpu.dimension_semantics<arbitrary>], iteration_bounds = array<i64: 1, 4, 1>, scalar_prefetch = 0 : i64, scratch_operands = 1 : i64, tpu.core_type = #tpu.core_type<tc>, window_params = [{transform_indices = @transform_0, window_bounds = array<i64: 16, 128>}, {transform_indices = @transform_1, window_bounds = array<i64: 1, 128, 256>}, {transform_indices = @transform_2, window_bounds = array<i64: 1, 1, 256>}, {transform_indices = @transform_3, window_bounds = array<i64: 1, 256, 128>}, {transform_indices = @transform_4, window_bounds = array<i64: 1, 1, 128>}, {transform_indices = @transform_5, window_bounds = array<i64: 1, 16, 1>}, {transform_indices = @transform_6, window_bounds = array<i64: 16, 128>}]} {
    %c0_i32 = arith.constant 0 : i32
    %0 = arith.cmpi eq, %arg1, %c0_i32 : i32
    %c0_i32_0 = arith.constant 0 : i32
    %1 = arith.cmpi eq, %arg2, %c0_i32_0 : i32
    %2 = arith.andi %0, %1 : i1
    %3 = arith.extui %2 : i1 to i32
    %c0_i32_1 = arith.constant 0 : i32
    %4 = arith.cmpi ne, %3, %c0_i32_1 : i32
    scf.if %4 {
      %cst_25 = arith.constant 0.000000e+00 : f32
      %34 = vector.broadcast %cst_25 : f32 to vector<16x128xf32>
      %c0_26 = arith.constant 0 : index
      %c0_27 = arith.constant 0 : index
      %35 = vector.load %arg10[%c0_26, %c0_27] : memref<16x128xf32, #tpu.memory_space<vmem>>, vector<16x128xf32>
      tpu.vector_store %arg10[%c0_26, %c0_27], %34 {strides = array<i32>} : memref<16x128xf32, #tpu.memory_space<vmem>>, vector<16x128xf32>,
    } else {
    }
    %c0 = arith.constant 0 : index
    %c0_2 = arith.constant 0 : index
    %5 = vector.load %arg3[%c0, %c0_2] : memref<16x128xbf16, #tpu.memory_space<vmem>>, vector<16x128xbf16>
    %c0_3 = arith.constant 0 : index
    %c0_4 = arith.constant 0 : index
    %c0_5 = arith.constant 0 : index
    %6 = vector.load %arg4[%c0_3, %c0_4, %c0_5] : memref<1x128x256xbf16, #tpu.memory_space<vmem>>, vector<1x128x256xbf16>
    %7 = vector.shape_cast %6 : vector<1x128x256xbf16> to vector<128x256xbf16>
    %cst = arith.constant dense<0.000000e+00> : vector<16x256xf32>
    %8 = tpu.matmul %5, %7, %cst {dimension_numbers = #tpu.dot_dimension_numbers<[1], [0], [0], [1], [0, 0, 1, 1], [], []>} : vector<16x128xbf16>, vector<128x256xbf16>, vector<16x256xf32> -> vector<16x256xf32>
    %c0_6 = arith.constant 0 : index
    %c0_7 = arith.constant 0 : index
    %c0_8 = arith.constant 0 : index
    %9 = vector.load %arg5[%c0_6, %c0_7, %c0_8] : memref<1x1x256xf32, #tpu.memory_space<vmem>>, vector<1x1x256xf32>
    %10 = vector.shape_cast %9 : vector<1x1x256xf32> to vector<1x256xf32>
    %11 = vector.broadcast %10 : vector<1x256xf32> to vector<16x256xf32>
    %12 = arith.addf %8, %11 : vector<16x256xf32>
    %cst_9 = arith.constant 0.000000e+00 : f32
    %13 = vector.broadcast %cst_9 : f32 to vector<16x256xf32>
    %14 = arith.maximumf %12, %13 : vector<16x256xf32>
    %15 = arith.truncf %14 : vector<16x256xf32> to vector<16x256xbf16>
    %c0_10 = arith.constant 0 : index
    %c0_11 = arith.constant 0 : index
    %c0_12 = arith.constant 0 : index
    %16 = vector.load %arg6[%c0_10, %c0_11, %c0_12] : memref<1x256x128xbf16, #tpu.memory_space<vmem>>, vector<1x256x128xbf16>
    %17 = vector.shape_cast %16 : vector<1x256x128xbf16> to vector<256x128xbf16>
    %cst_13 = arith.constant dense<0.000000e+00> : vector<16x128xf32>
    %18 = tpu.matmul %15, %17, %cst_13 {dimension_numbers = #tpu.dot_dimension_numbers<[1], [0], [0], [1], [0, 0, 1, 1], [], []>} : vector<16x256xbf16>, vector<256x128xbf16>, vector<16x128xf32> -> vector<16x128xf32>
    %c0_14 = arith.constant 0 : index
    %c0_15 = arith.constant 0 : index
    %c0_16 = arith.constant 0 : index
    %19 = vector.load %arg8[%c0_14, %c0_15, %c0_16] : memref<1x16x1xf32, #tpu.memory_space<vmem>>, vector<1x16x1xf32>
    %20 = vector.shape_cast %19 : vector<1x16x1xf32> to vector<16x1xf32>
    %c0_17 = arith.constant 0 : index
    %c0_18 = arith.constant 0 : index
    %21 = vector.load %arg10[%c0_17, %c0_18] : memref<16x128xf32, #tpu.memory_space<vmem>>, vector<16x128xf32>
    %22 = vector.broadcast %20 : vector<16x1xf32> to vector<16x128xf32>
    %23 = arith.mulf %22, %18 : vector<16x128xf32>
    %24 = arith.addf %21, %23 : vector<16x128xf32>
    %c0_19 = arith.constant 0 : index
    %c0_20 = arith.constant 0 : index
    %25 = vector.load %arg10[%c0_19, %c0_20] : memref<16x128xf32, #tpu.memory_space<vmem>>, vector<16x128xf32>
    tpu.vector_store %arg10[%c0_19, %c0_20], %24 {strides = array<i32>} : memref<16x128xf32, #tpu.memory_space<vmem>>, vector<16x128xf32>,
    %c0_i32_21 = arith.constant 0 : i32
    %26 = arith.cmpi eq, %arg2, %c0_i32_21 : i32
    %27 = arith.extui %26 : i1 to i32
    %c0_i32_22 = arith.constant 0 : i32
    %28 = arith.cmpi ne, %27, %c0_i32_22 : i32
    scf.if %28 {
      %c0_25 = arith.constant 0 : index
      %c0_26 = arith.constant 0 : index
      %34 = vector.load %arg10[%c0_25, %c0_26] : memref<16x128xf32, #tpu.memory_space<vmem>>, vector<16x128xf32>
      %c0_27 = arith.constant 0 : index
      %c0_28 = arith.constant 0 : index
      %c0_29 = arith.constant 0 : index
      %35 = vector.load %arg7[%c0_27, %c0_28, %c0_29] : memref<1x1x128xf32, #tpu.memory_space<vmem>>, vector<1x1x128xf32>
      %36 = vector.shape_cast %35 : vector<1x1x128xf32> to vector<1x128xf32>
      %37 = vector.broadcast %20 : vector<16x1xf32> to vector<16x128xf32>
      %38 = vector.broadcast %36 : vector<1x128xf32> to vector<16x128xf32>
      %39 = arith.mulf %37, %38 : vector<16x128xf32>
      %40 = arith.addf %34, %39 : vector<16x128xf32>
      %c0_30 = arith.constant 0 : index
      %c0_31 = arith.constant 0 : index
      %41 = vector.load %arg10[%c0_30, %c0_31] : memref<16x128xf32, #tpu.memory_space<vmem>>, vector<16x128xf32>
      tpu.vector_store %arg10[%c0_30, %c0_31], %40 {strides = array<i32>} : memref<16x128xf32, #tpu.memory_space<vmem>>, vector<16x128xf32>,
    } else {
    }
    %c3_i32 = arith.constant 3 : i32
    %29 = arith.cmpi eq, %arg1, %c3_i32 : i32
    %c0_i32_23 = arith.constant 0 : i32
    %30 = arith.cmpi eq, %arg2, %c0_i32_23 : i32
    %31 = arith.andi %29, %30 : i1
    %32 = arith.extui %31 : i1 to i32
    %c0_i32_24 = arith.constant 0 : i32
    %33 = arith.cmpi ne, %32, %c0_i32_24 : i32
    scf.if %33 {
      %c0_25 = arith.constant 0 : index
      %c0_26 = arith.constant 0 : index
      %34 = vector.load %arg10[%c0_25, %c0_26] : memref<16x128xf32, #tpu.memory_space<vmem>>, vector<16x128xf32>
      %35 = arith.truncf %34 : vector<16x128xf32> to vector<16x128xbf16>
      %c0_27 = arith.constant 0 : index
      %c0_28 = arith.constant 0 : index
      %36 = vector.load %arg9[%c0_27, %c0_28] : memref<16x128xbf16, #tpu.memory_space<vmem>>, vector<16x128xbf16>
      tpu.vector_store %arg9[%c0_27, %c0_28], %35 {strides = array<i32>} : memref<16x128xbf16, #tpu.memory_space<vmem>>, vector<16x128xbf16>,
    } else {
    }
    return
  }
  func.func @transform_0(%arg0: i32, %arg1: i32, %arg2: i32) -> (i32, i32) {
    %c0_i32 = arith.constant 0 : i32
    %c0_i32_0 = arith.constant 0 : i32
    return %arg0, %c0_i32 : i32, i32
  }
  func.func @transform_1(%arg0: i32, %arg1: i32, %arg2: i32) -> (i32, i32, i32) {
    %c0_i32 = arith.constant 0 : i32
    %c0_i32_0 = arith.constant 0 : i32
    return %arg1, %c0_i32, %arg2 : i32, i32, i32
  }
  func.func @transform_2(%arg0: i32, %arg1: i32, %arg2: i32) -> (i32, i32, i32) {
    %c0_i32 = arith.constant 0 : i32
    %c0_i32_0 = arith.constant 0 : i32
    return %arg1, %c0_i32, %arg2 : i32, i32, i32
  }
  func.func @transform_3(%arg0: i32, %arg1: i32, %arg2: i32) -> (i32, i32, i32) {
    %c0_i32 = arith.constant 0 : i32
    %c0_i32_0 = arith.constant 0 : i32
    return %arg1, %arg2, %c0_i32 : i32, i32, i32
  }
  func.func @transform_4(%arg0: i32, %arg1: i32, %arg2: i32) -> (i32, i32, i32) {
    %c0_i32 = arith.constant 0 : i32
    %c0_i32_0 = arith.constant 0 : i32
    %c0_i32_1 = arith.constant 0 : i32
    return %arg1, %c0_i32, %c0_i32_0 : i32, i32, i32
  }
  func.func @transform_5(%arg0: i32, %arg1: i32, %arg2: i32) -> (i32, i32, i32) {
    %c0_i32 = arith.constant 0 : i32
    %c0_i32_0 = arith.constant 0 : i32
    return %arg1, %arg0, %c0_i32 : i32, i32, i32
  }
  func.func @transform_6(%arg0: i32, %arg1: i32, %arg2: i32) -> (i32, i32) {
    %c0_i32 = arith.constant 0 : i32
    %c0_i32_0 = arith.constant 0 : i32
    return %arg0, %c0_i32 : i32, i32
  }
}

module attributes {stable_mosaic.version = 11 : i64} {
  func.func @_resnet_kernel(%arg0: i32, %arg1: memref<16x128xbf16, #tpu.memory_space<vmem>>, %arg2: memref<128x128xbf16, #tpu.memory_space<vmem>>, %arg3: memref<1x128xf32, #tpu.memory_space<vmem>>, %arg4: memref<128x64xbf16, #tpu.memory_space<vmem>>, %arg5: memref<1x64xf32, #tpu.memory_space<vmem>>, %arg6: memref<128x64xbf16, #tpu.memory_space<vmem>>, %arg7: memref<64x3xbf16, #tpu.memory_space<vmem>>, %arg8: memref<1x3xf32, #tpu.memory_space<vmem>>, %arg9: memref<16x3xf32, #tpu.memory_space<vmem>>) attributes {dimension_semantics = [#tpu.dimension_semantics<parallel>], iteration_bounds = array<i64: 1>, scalar_prefetch = 0 : i64, scratch_operands = 0 : i64, tpu.core_type = #tpu.core_type<tc>, window_params = [{transform_indices = @transform_0, window_bounds = array<i64: 16, 128>}, {pipeline_mode = #tpu.pipeline_mode<synchronous>, transform_indices = @transform_1, window_bounds = array<i64: 128, 128>}, {pipeline_mode = #tpu.pipeline_mode<synchronous>, transform_indices = @transform_2, window_bounds = array<i64: 1, 128>}, {pipeline_mode = #tpu.pipeline_mode<synchronous>, transform_indices = @transform_3, window_bounds = array<i64: 128, 64>}, {pipeline_mode = #tpu.pipeline_mode<synchronous>, transform_indices = @transform_4, window_bounds = array<i64: 1, 64>}, {pipeline_mode = #tpu.pipeline_mode<synchronous>, transform_indices = @transform_5, window_bounds = array<i64: 128, 64>}, {pipeline_mode = #tpu.pipeline_mode<synchronous>, transform_indices = @transform_6, window_bounds = array<i64: 64, 3>}, {pipeline_mode = #tpu.pipeline_mode<synchronous>, transform_indices = @transform_7, window_bounds = array<i64: 1, 3>}, {transform_indices = @transform_8, window_bounds = array<i64: 16, 3>}]} {
    %c0 = arith.constant 0 : index
    %c0_0 = arith.constant 0 : index
    %0 = vector.load %arg1[%c0, %c0_0] : memref<16x128xbf16, #tpu.memory_space<vmem>>, vector<16x128xbf16>
    %1 = arith.extf %0 : vector<16x128xbf16> to vector<16x128xf32>
    %c0_1 = arith.constant 0 : index
    %c0_2 = arith.constant 0 : index
    %2 = vector.load %arg1[%c0_1, %c0_2] : memref<16x128xbf16, #tpu.memory_space<vmem>>, vector<16x128xbf16>
    %c0_3 = arith.constant 0 : index
    %c0_4 = arith.constant 0 : index
    %3 = vector.load %arg2[%c0_3, %c0_4] : memref<128x128xbf16, #tpu.memory_space<vmem>>, vector<128x128xbf16>
    %cst = arith.constant dense<0.000000e+00> : vector<16x128xf32>
    %4 = tpu.matmul %2, %3, %cst {dimension_numbers = #tpu.dot_dimension_numbers<[1], [0], [0], [1], [0, 0, 1, 1], [], []>} : vector<16x128xbf16>, vector<128x128xbf16>, vector<16x128xf32> -> vector<16x128xf32>
    %c0_5 = arith.constant 0 : index
    %c0_6 = arith.constant 0 : index
    %5 = vector.load %arg3[%c0_5, %c0_6] : memref<1x128xf32, #tpu.memory_space<vmem>>, vector<1x128xf32>
    %6 = vector.broadcast %5 : vector<1x128xf32> to vector<16x128xf32>
    %7 = arith.addf %4, %6 : vector<16x128xf32>
    %cst_7 = arith.constant 0.000000e+00 : f32
    %8 = vector.broadcast %cst_7 : f32 to vector<16x128xf32>
    %9 = arith.cmpf ogt, %7, %8 : vector<16x128xf32>
    %cst_8 = arith.constant 0.00999999977 : f32
    %10 = vector.broadcast %cst_8 : f32 to vector<16x128xf32>
    %11 = arith.mulf %10, %7 : vector<16x128xf32>
    %12 = arith.select %9, %7, %11 : vector<16x128xi1>, vector<16x128xf32>
    %13 = arith.addf %12, %1 : vector<16x128xf32>
    %14 = arith.truncf %13 : vector<16x128xf32> to vector<16x128xbf16>
    %c0_9 = arith.constant 0 : index
    %c0_10 = arith.constant 0 : index
    %15 = vector.load %arg4[%c0_9, %c0_10] : memref<128x64xbf16, #tpu.memory_space<vmem>>, vector<128x64xbf16>
    %cst_11 = arith.constant dense<0.000000e+00> : vector<16x64xf32>
    %16 = tpu.matmul %14, %15, %cst_11 {dimension_numbers = #tpu.dot_dimension_numbers<[1], [0], [0], [1], [0, 0, 1, 1], [], []>} : vector<16x128xbf16>, vector<128x64xbf16>, vector<16x64xf32> -> vector<16x64xf32>
    %c0_12 = arith.constant 0 : index
    %c0_13 = arith.constant 0 : index
    %17 = vector.load %arg5[%c0_12, %c0_13] : memref<1x64xf32, #tpu.memory_space<vmem>>, vector<1x64xf32>
    %18 = vector.broadcast %17 : vector<1x64xf32> to vector<16x64xf32>
    %19 = arith.addf %16, %18 : vector<16x64xf32>
    %cst_14 = arith.constant 0.000000e+00 : f32
    %20 = vector.broadcast %cst_14 : f32 to vector<16x64xf32>
    %21 = arith.cmpf ogt, %19, %20 : vector<16x64xf32>
    %cst_15 = arith.constant 0.00999999977 : f32
    %22 = vector.broadcast %cst_15 : f32 to vector<16x64xf32>
    %23 = arith.mulf %22, %19 : vector<16x64xf32>
    %24 = arith.select %21, %19, %23 : vector<16x64xi1>, vector<16x64xf32>
    %c0_16 = arith.constant 0 : index
    %c0_17 = arith.constant 0 : index
    %25 = vector.load %arg6[%c0_16, %c0_17] : memref<128x64xbf16, #tpu.memory_space<vmem>>, vector<128x64xbf16>
    %cst_18 = arith.constant dense<0.000000e+00> : vector<16x64xf32>
    %26 = tpu.matmul %14, %25, %cst_18 {dimension_numbers = #tpu.dot_dimension_numbers<[1], [0], [0], [1], [0, 0, 1, 1], [], []>} : vector<16x128xbf16>, vector<128x64xbf16>, vector<16x64xf32> -> vector<16x64xf32>
    %27 = arith.addf %24, %26 : vector<16x64xf32>
    %28 = arith.truncf %27 : vector<16x64xf32> to vector<16x64xbf16>
    %c0_19 = arith.constant 0 : index
    %c0_20 = arith.constant 0 : index
    %29 = vector.load %arg7[%c0_19, %c0_20] : memref<64x3xbf16, #tpu.memory_space<vmem>>, vector<64x3xbf16>
    %cst_21 = arith.constant dense<0.000000e+00> : vector<16x3xf32>
    %30 = tpu.matmul %28, %29, %cst_21 {dimension_numbers = #tpu.dot_dimension_numbers<[1], [0], [0], [1], [0, 0, 1, 1], [], []>} : vector<16x64xbf16>, vector<64x3xbf16>, vector<16x3xf32> -> vector<16x3xf32>
    %c0_22 = arith.constant 0 : index
    %c0_23 = arith.constant 0 : index
    %31 = vector.load %arg8[%c0_22, %c0_23] : memref<1x3xf32, #tpu.memory_space<vmem>>, vector<1x3xf32>
    %32 = vector.broadcast %31 : vector<1x3xf32> to vector<16x3xf32>
    %33 = arith.addf %30, %32 : vector<16x3xf32>
    %c0_24 = arith.constant 0 : index
    %c0_25 = arith.constant 0 : index
    %34 = vector.load %arg9[%c0_24, %c0_25] : memref<16x3xf32, #tpu.memory_space<vmem>>, vector<16x3xf32>
    tpu.vector_store %arg9[%c0_24, %c0_25], %33 {strides = array<i32>} : memref<16x3xf32, #tpu.memory_space<vmem>>, vector<16x3xf32>,
    return
  }
  func.func @transform_0(%arg0: i32) -> (i32, i32) {
    %c0_i32 = arith.constant 0 : i32
    %c0_i32_0 = arith.constant 0 : i32
    return %arg0, %c0_i32 : i32, i32
  }
  func.func @transform_1(%arg0: i32) -> (i32, i32) {
    %c0_i32 = arith.constant 0 : i32
    %c0_i32_0 = arith.constant 0 : i32
    %c0_i32_1 = arith.constant 0 : i32
    return %c0_i32, %c0_i32_0 : i32, i32
  }
  func.func @transform_2(%arg0: i32) -> (i32, i32) {
    %c0_i32 = arith.constant 0 : i32
    %c0_i32_0 = arith.constant 0 : i32
    %c0_i32_1 = arith.constant 0 : i32
    return %c0_i32, %c0_i32_0 : i32, i32
  }
  func.func @transform_3(%arg0: i32) -> (i32, i32) {
    %c0_i32 = arith.constant 0 : i32
    %c0_i32_0 = arith.constant 0 : i32
    %c0_i32_1 = arith.constant 0 : i32
    return %c0_i32, %c0_i32_0 : i32, i32
  }
  func.func @transform_4(%arg0: i32) -> (i32, i32) {
    %c0_i32 = arith.constant 0 : i32
    %c0_i32_0 = arith.constant 0 : i32
    %c0_i32_1 = arith.constant 0 : i32
    return %c0_i32, %c0_i32_0 : i32, i32
  }
  func.func @transform_5(%arg0: i32) -> (i32, i32) {
    %c0_i32 = arith.constant 0 : i32
    %c0_i32_0 = arith.constant 0 : i32
    %c0_i32_1 = arith.constant 0 : i32
    return %c0_i32, %c0_i32_0 : i32, i32
  }
  func.func @transform_6(%arg0: i32) -> (i32, i32) {
    %c0_i32 = arith.constant 0 : i32
    %c0_i32_0 = arith.constant 0 : i32
    %c0_i32_1 = arith.constant 0 : i32
    return %c0_i32, %c0_i32_0 : i32, i32
  }
  func.func @transform_7(%arg0: i32) -> (i32, i32) {
    %c0_i32 = arith.constant 0 : i32
    %c0_i32_0 = arith.constant 0 : i32
    %c0_i32_1 = arith.constant 0 : i32
    return %c0_i32, %c0_i32_0 : i32, i32
  }
  func.func @transform_8(%arg0: i32) -> (i32, i32) {
    %c0_i32 = arith.constant 0 : i32
    %c0_i32_0 = arith.constant 0 : i32
    return %arg0, %c0_i32 : i32, i32
  }
}

</mosaic_0001>

<bundles_post_ra>
// kernel: madani_forward.11
= control target key start
LH: loop header
LB: loop body
LE: loop exit
PB: predicated region body
PF: predicated region fallthrough
CT: control target
= control target key end

     0   :  { %8 = vsyncpa [#allocation4], 0  ;;  %s174_s12 = smov [#allocation3]   ;;  %s224_s0 = inlined_call_operand.vmem [shape: bf16[16,32], index: 0, kind: input, shape index: {}]   ;;  %s225_s1 = inlined_call_operand.vmem [shape: bf16[32,128], index: 1, kind: input, shape index: {}]   ;;  %s226_s2 = inlined_call_operand.hbm [shape: f32[1,128], index: 2, kind: input, shape index: {}]   ;;  %s227_s3 = inlined_call_operand.vmem [shape: f32[16,128], index: 3, kind: output, shape index: {}]  }
   0x1   :  { %s19_s13 = sshll.u32 %s174_s12, 4  ;;  %s150_s16 = scalar_lea.hbm %s226_s2, 16  ;;  %s20_s13 = int_to_ptr.vmem [resolvable:$true] %s19_s13 }
   0x2   :  { %p151_p0 = scmp.ne.s32.totalorder %s226_s2, %s150_s16  ;;  %p154_p1 = scmp.lt.u32.totalorder %s150_s16, %s226_s2 }
   0x4   :  { %p156_p2 = pnand %p154_p1, %p151_p0 }
   0x6   :  { %159 = shalt.err (!%p156_p2)
}
   0x7   :  { %s160_s21 = scalar_lea.vmem %s20_s13, 16  ;;  %s164_s22 = scalar_lea.vmem %s20_s13, 32 }
   0x8   :  { %p161_p3 = scmp.ne.s32.totalorder %s20_s13, %s160_s21  ;;  %p165_p4 = scmp.lt.s32.totalorder %s20_s13, %s20_s13 }
   0x9   :  { %p166_p5 = scmp.lt.s32.totalorder %s164_s22, %s160_s21 }
   0xb   :  { %p167_p6 = por %p166_p5, %p165_p4 }
   0xd   :  { %p168_p7 = pnand %p167_p6, %p161_p3 }
   0xf   :  { %171 = shalt.err (!%p168_p7)
}
  0x10   :  { %22 = dma.hbm_to_vmem [thread:$0]  %s226_s2, 16, %s20_s13, [#allocation4]  }
  0x11   :  { %172 = dma.done.wait [#allocation4], 16  }
  0x12   :  { %173 = vsyncadd [#allocation4], 4294967280  ;;  %v175_v0 = vmov 0.0   ;;  %vm176_vm0 = vmmov 0   ;;  %v147_v1 = vld [vmem:[%s225_s1] sm:$0xff]   ;;  %v148_v2 = vld [vmem:[%s225_s1 + $0x8] sm:$0xff]  }
  0x13   :  { %136 = vmatprep.subr.bf16.mxu0 %v175_v0  ;;  %140 = vmatprep.mubr.msk.bf16.mxu0 %vm176_vm0, %v175_v0  ;;  %v149_v3 = vld [vmem:[%s224_s0] sm:$0xff]   ;;  %vm58_vm1 = vcmask 261120  }
  0x14   :  { %137 = vmatpush3.bf16.msra.mxu0 %v147_v1  ;;  %v132_v4 = vld [vmem:[#allocation3] ss:$0 sm:$0xff] }
  0x15   :  { %138 = vmatprep.subr.bf16.mxu0 %v175_v0 }
  0x18   :  { %139 = vmatpush3.bf16.msra.mxu0 %v148_v2 }
  0x1b   :  { %141 = vmatmul.mubr.msk.bf16.vlgmr.msra.gmra.mrb[0].mxu0 %vm58_vm1, %v149_v3 }
  0xee   :  { %v96_v5 = vpop.f32.mrb[0].mxu0 }
  0xef   :  { %v119_v6 = vadd.f32 %v132_v4, %v96_v5  ;;  %v142_v7 = vpop.f32.mrb[1].mxu0 }
  0xf0   :  { %v99_v8 = vpop.f32.mrb[2].mxu0 }
  0xf1   :  { %121 = vst [vmem:[%s227_s3] sm:$0xff] %v119_v6  ;;  %v120_v9 = vadd.f32 %v132_v4, %v99_v8  ;;  %v143_v10 = vpop.f32.mrb[3].mxu0 }
  0xf3   :  { %122 = vst [vmem:[%s227_s3 + $0x8] sm:$0xff] %v120_v9 }
  0xf4   :  { %127 = vsyncpa [#allocation4], 1 }

// kernel: madani_forward.12
= control target key start
LH: loop header
LB: loop body
LE: loop exit
PB: predicated region body
PF: predicated region fallthrough
CT: control target
= control target key end

     0   :  { %15 = vsyncpa [#allocation4], 0  ;;  %s1602_s13 = smov 0   ;;  %s1604_s14 = smov 0   ;;  %s1829_s0 = inlined_call_operand.vmem [shape: bf16[2,8,128], index: 0, kind: input, shape index: {}]   ;;  %s1830_s1 = inlined_call_operand.vmem [shape: f32[2,1,8], index: 1, kind: input, shape index: {}]   ;;  %s1831_s2 = inlined_call_operand.vmem [shape: bf16[4,128,32], index: 2, kind: input, shape index: {}]   ;;  %s1832_s3 = inlined_call_operand.vmem [shape: f32[4,1,32], index: 3, kind: input, shape index: {}]   ;;  %s1833_s4 = inlined_call_operand.vmem [shape: bf16[4,128,32], index: 4, kind: input, shape index: {}]   ;;  %s1834_s5 = inlined_call_operand.vmem [shape: f32[4,1,32], index: 5, kind: input, shape index: {}]   ;;  %s1835_s6 = inlined_call_operand.vmem [shape: bf16[4,128,32], index: 6, kind: input, shape index: {}]   ;;  %s1836_s7 = inlined_call_operand.vmem [shape: f32[4,1,32], index: 7, kind: input, shape index: {}]   ;;  %s1837_s8 = inlined_call_operand.vmem [shape: bf16[4,32,128], index: 8, kind: input, shape index: {}]   ;;  %s1838_s9 = inlined_call_operand.hbm [shape: f32[1,128], index: 9, kind: input, shape index: {}]   ;;  %s1839_s10 = inlined_call_operand.vmem [shape: bf16[2,8,128], index: 10, kind: output, shape index: {}]  }
   0x1   :  { %s1606_s15 = smov 0   ;;  %s1608_s16 = smov 0  }
   0x2   :  { %s1610_s17 = smov 0  }
   0x3 LB: > { %s1214_s18 = sadd.s32 4294967295, %s1541_s17   ;;  %s30_s19 = sadd.s32 1, %s1533_s15  ;;  %s1541_s17 = sphi %s1610_s17, %s21_s17   ;;  %s1537_s16 = sphi %s1608_s16, %s1851_s16   ;;  %s1533_s15 = sphi %s1606_s15, %s1850_s15   ;;  %s1529_s14 = sphi %s1604_s14, %s1849_s14   ;;  %s1525_s13 = sphi %s1602_s13, %s1848_s13  }
   0x4   : > { %p31_p0 = scmp.ge.s32.totalorder %s30_s19, 4  ;;  %s33_s20 = sadd.s32 1, %s1537_s16 }
   0x5   : > { %p1216_p1 = scmp.ge.s32.totalorder %s1541_s17, 1  ;;  %p319_p2 = scmp.lt.s32.totalorder %s1541_s17, 9 }
   0x6   : > { %s1853_s19 = smov (%p31_p0, %s30_s19), 0  ;;  %s1855_s20 = smov (!%p31_p0, %s33_s20), %s1537_s16 }
   0x7   : > { %p1635_p3 = pnand %p1216_p1, %p319_p2  ;;  %p35_p4 = scmp.ge.s32.totalorder %s1855_s20, 2 }
   0x8   : > { %p1639_p5 = scmp.eq.s32.totalorder %s1214_s18, 0  ;;  %s1543_s23 = smov [#allocation3]  }
   0x9   : > { %s1843_s21 = scalar_select %p1635_p3, 1, 0 }
   0xa   : > { %s1844_s22 = scalar_select %p1639_p5, 1, 0 }
   0xb   : > { %p1391_p6 = pneg %p1635_p3  ;;  %s1857_s20 = smov (%p35_p4, %s1855_s20), 0 }
   0xc   : > { %s332_s24 = sshll.u32 %s1543_s23, 4  ;;  %s1471_s28 = scalar_lea.hbm %s1838_s9, 16  ;;  %s333_s24 = int_to_ptr.vmem [resolvable:$true] %s332_s24 }
   0xd   : > { %p1649_p7 = pnand %p1639_p5, %p1391_p6  ;;  %p1472_p8 = scmp.ne.s32.totalorder %s1838_s9, %s1471_s28 }
   0xe   : > { %p1478_p12 = scmp.lt.u32.totalorder %s1471_s28, %s1838_s9 }
   0xf   : > { %p1473_p9 = pneg %p1649_p7 }
  0x11   : > { %p1474_p10 = pnand %p1473_p9, %p1472_p8 }
  0x13   : > { %p1475_p11 = pneg %p1474_p10 }
  0x15   : > { %p1480_p13 = pnand %p1478_p12, %p1475_p11 }
  0x17   : > { %1483 = shalt.err (!%p1480_p13)
}
  0x18   : > { %s1484_s18 = scalar_lea.vmem %s333_s24, 16  ;;  %s1491_s23 = scalar_lea.vmem %s333_s24, 32 }
  0x19   : > { %p1485_p0 = scmp.ne.s32.totalorder %s333_s24, %s1484_s18  ;;  %p1492_p4 = scmp.lt.s32.totalorder %s333_s24, %s333_s24 }
  0x1a   : > { %p1493_p6 = scmp.lt.s32.totalorder %s1491_s23, %s1484_s18 }
  0x1b   : > { %p1487_p1 = pnand %p1485_p0, %p1473_p9 }
  0x1c   : > { %p1494_p5 = por %p1493_p6, %p1492_p4 }
  0x1d   : > { %p1488_p2 = pneg %p1487_p1 }
  0x1f   : > { %p1495_p3 = pnand %p1494_p5, %p1488_p2 }
  0x21   : > { %1498 = shalt.err (!%p1495_p3)
}
  0x22   : > { %1394 = dma.hbm_to_vmem [thread:$0]  (!%p1649_p7), %s1838_s9, 16, %s333_s24, [#allocation4]  }
  0x23   : > { %p1846_p8 = scmp.ne.s32.totalorder %s1843_s21, 0 }
  0x24   : > { %p1847_p10 = scmp.ne.s32.totalorder (!%p1846_p8), %s1844_s22, 0 }
  0x25   : > { %408 = sbr.rel (%p1846_p8) target bundleno = 1289 (0x509), region = 60 }
  0x2c   : > { %1520 = dma.done.wait (%p1847_p10), [#allocation4], 16  }
  0x2d   : > { %1522 = vsyncadd (%p1847_p10), [#allocation4], 4294967280  ;;  %p483_p3 = scmp.lt.s32.totalorder %s1525_s13, 3  ;;  %p476_p5 = scmp.lt.s32.totalorder %s1529_s14, 1  ;;  %v1544_v0 = vmov 0.0   ;;  %vm1545_vm0 = vmmov 0  }
  0x2e   : > { %1327 = vmatprep.subr.bf16.mxu1 %v1544_v0  ;;  %1307 = vmatprep.subr.bf16.mxu0 %v1544_v0  ;;  %vm853_vm1 = vcmask 261120   ;;  %vm909_vm2 = vcmask 64512   ;;  %vm926_vm3 = vcmask 1043456   ;;  %p1261_p7 = scmp.ne.s32.totalorder %s1525_s13, 0 }
  0x2f   : > { %s1680_s24 = scalar_select %p483_p3, %s1525_s13, 3  ;;  %1343 = vmatprep.mubr.msk.bf16.mxu1 %vm1545_vm0, %v1544_v0  ;;  %1323 = vmatprep.mubr.msk.bf16.mxu0 %vm1545_vm0, %v1544_v0 }
  0x30   : > { %s1859_s14 = smov (!%p476_p5, %s1529_s14), 1 }
  0x31   : > { %s1690_s21 = sshll.u32 %s1680_s24, 6  ;;  %s1272_s22 = sshll.u32 %s1680_s24, 4 }
  0x32   : > { %s1697_s29 = scalar_lea.vmem %s1833_s4, %s1690_s21  ;;  %s1702_s12 = scalar_lea.vmem %s1837_s8, %s1272_s22 }
  0x33   : > { %s1708_s26 = scalar_lea.vmem %s1831_s2, %s1690_s21  ;;  %v1441_v1 = vld [vmem:[%s1697_s29] sm:$0xff]   ;;  %s1221_s27 = sshll.u32 %s1859_s14, 2  ;;  %v1442_v2 = vld [vmem:[%s1697_s29 + $0x8] sm:$0xff]   ;;  %v1444_v5 = vld [vmem:[%s1697_s29 + $0x10] sm:$0xff]  }
  0x34   : > { %s1718_s30 = scalar_lea.vmem %s1839_s10, %s1221_s27  ;;  %1328 = vmatpush3.bf16.msra.mxu1 %v1441_v1  ;;  %v1443_v3 = vld [vmem:[%s1708_s26] sm:$0xff]   ;;  %v1445_v4 = vld [vmem:[%s1708_s26 + $0x8] sm:$0xff]   ;;  %v1447_v6 = vld [vmem:[%s1708_s26 + $0x10] sm:$0xff]   ;;  %s1737_s18 = scalar_lea.vmem %s1835_s6, %s1690_s21 }
  0x35   : > { %1329 = vmatprep.subr.bf16.mxu1 %v1544_v0  ;;  %1308 = vmatpush3.bf16.msra.mxu0 %v1443_v3  ;;  %v1446_v7 = vld [vmem:[%s1697_s29 + $0x18] sm:$0xff]   ;;  %v1448_v9 = vld [vmem:[%s1697_s29 + $0x20] sm:$0xff]   ;;  %v1450_v10 = vld [vmem:[%s1697_s29 + $0x28] sm:$0xff]   ;;  %s479_s25 = scalar_lea.vmem %s1829_s0, %s1221_s27  ;;  %s490_s11 = scalar_lea.vmem %s1832_s3, %s1680_s24 }
  0x36   : > { %1309 = vmatprep.subr.bf16.mxu0 %v1544_v0  ;;  %v1449_v8 = vld [vmem:[%s1708_s26 + $0x18] sm:$0xff]   ;;  %v1451_v11 = vld [vmem:[%s1708_s26 + $0x20] sm:$0xff]   ;;  %v1453_v12 = vld [vmem:[%s1708_s26 + $0x28] sm:$0xff]  }
  0x37   : > { %v1452_v13 = vld [vmem:[%s1697_s29 + $0x30] sm:$0xff]   ;;  %v1454_v15 = vld [vmem:[%s1697_s29 + $0x38] sm:$0xff]   ;;  %v517_v17 = vld [vmem:[%s479_s25] sm:$0xf]  ;;  %s482_s25 = scalar_lea.vmem %s1830_s1, %s1859_s14  ;;  %s506_s29 = scalar_lea.vmem %s1836_s7, %s1680_s24 }
  0x38   : > { %1330 = vmatpush3.bf16.msra.mxu1 %v1442_v2  ;;  %v1455_v14 = vld [vmem:[%s1708_s26 + $0x30] sm:$0xff]   ;;  %v1456_v16 = vld [vmem:[%s1708_s26 + $0x38] sm:$0xff]   ;;  %s498_s26 = scalar_lea.vmem %s1834_s5, %s1680_s24  ;;  %v1231_v23 = vld [vmem:[%s490_s11] ss:$0 sm:$0xff] }
  0x39   : > { %1331 = vmatprep.subr.bf16.mxu1 %v1544_v0  ;;  %1310 = vmatpush3.bf16.msra.mxu0 %v1445_v4  ;;  %v1240_v18 = vld [vmem:[%s498_s26] ss:$0 sm:$0xff]  ;;  %v1458_v34 = vld [vmem:[%s1737_s18 + $0x8] sm:$0xff]   ;;  %v1459_v35 = vld [vmem:[%s1737_s18 + $0x10] sm:$0xff]  }
  0x3a   : > { %1311 = vmatprep.subr.bf16.mxu0 %v1544_v0  ;;  %v1457_v33 = vld [vmem:[%s1737_s18] sm:$0xff]   ;;  %v1460_v36 = vld [vmem:[%s1737_s18 + $0x18] sm:$0xff]   ;;  %v1462_v38 = vld [vmem:[%s1737_s18 + $0x28] sm:$0xff]  }
  0x3b   : > { %v1461_v37 = vld [vmem:[%s1737_s18 + $0x20] sm:$0xff]   ;;  %v1463_v39 = vld [vmem:[%s1737_s18 + $0x30] sm:$0xff]   ;;  %v1464_v40 = vld [vmem:[%s1737_s18 + $0x38] sm:$0xff]  }
  0x3c   : > { %1332 = vmatpush3.bf16.msra.mxu1 %v1444_v5  ;;  %v1259_v42 = vld [vmem:[%s482_s25] ss:$0 sm:$0xff] }
  0x3d   : > { %1333 = vmatprep.subr.bf16.mxu1 %v1544_v0  ;;  %1312 = vmatpush3.bf16.msra.mxu0 %v1447_v6  ;;  %v1249_v57 = vld [vmem:[%s506_s29] ss:$0 sm:$0xff] }
  0x3e   : > { %1313 = vmatprep.subr.bf16.mxu0 %v1544_v0 }
  0x40   : > { %1334 = vmatpush3.bf16.msra.mxu1 %v1446_v7  ;;  %v1546_v7 = vmov (!%p1261_p7), 0.0  }
  0x41   : > { %1335 = vmatprep.subr.bf16.mxu1 %v1544_v0  ;;  %1314 = vmatpush3.bf16.msra.mxu0 %v1449_v8  ;;  %974 = vst [vmem:[#allocation2] sm:$0xff] (!%p1261_p7), %v1546_v7 }
  0x42   : > { %1315 = vmatprep.subr.bf16.mxu0 %v1544_v0 }
  0x44   : > { %1336 = vmatpush3.bf16.msra.mxu1 %v1448_v9 }
  0x45   : > { %1337 = vmatprep.subr.bf16.mxu1 %v1544_v0  ;;  %1316 = vmatpush3.bf16.msra.mxu0 %v1451_v11 }
  0x46   : > { %1317 = vmatprep.subr.bf16.mxu0 %v1544_v0 }
  0x48   : > { %1338 = vmatpush3.bf16.msra.mxu1 %v1450_v10 }
  0x49   : > { %1339 = vmatprep.subr.bf16.mxu1 %v1544_v0  ;;  %1318 = vmatpush3.bf16.msra.mxu0 %v1453_v12 }
  0x4a   : > { %1319 = vmatprep.subr.bf16.mxu0 %v1544_v0 }
  0x4c   : > { %1340 = vmatpush3.bf16.msra.mxu1 %v1452_v13 }
  0x4d   : > { %1341 = vmatprep.subr.bf16.mxu1 %v1544_v0  ;;  %1320 = vmatpush3.bf16.msra.mxu0 %v1455_v14 }
  0x4e   : > { %1321 = vmatprep.subr.bf16.mxu0 %v1544_v0 }
  0x50   : > { %1342 = vmatpush3.bf16.msra.mxu1 %v1454_v15 }
  0x51   : > { %1367 = vmatprep.subr.bf16.mxu1 %v1544_v0  ;;  %1322 = vmatpush3.bf16.msra.mxu0 %v1456_v16 }
  0x52   : > { %1347 = vmatprep.subr.bf16.mxu0 %v1544_v0 }
  0x53   : > { %1344 = vmatmul.mubr.bf16.vlgmr.msra.gmra.mrb[0].mxu1 %v517_v17 }
  0x54   : > { %1369 = vmatprep.mubr.msk.bf16.mxu1 %vm1545_vm0, %v1544_v0  ;;  %1324 = vmatmul.mubr.bf16.vlgmr.msra.gmra.mrb[0].mxu0 %v517_v17 }
  0x55   : > { %1363 = vmatprep.mubr.msk.bf16.mxu0 %vm1545_vm0, %v1544_v0  ;;  %1348 = vmatpush3.bf16.msra.mxu0 %v1457_v33 }
  0x56   : > { %1349 = vmatprep.subr.bf16.mxu0 %v1544_v0 }
  0x59   : > { %1350 = vmatpush3.bf16.msra.mxu0 %v1458_v34 }
  0x5a   : > { %1351 = vmatprep.subr.bf16.mxu0 %v1544_v0 }
  0x5d   : > { %1352 = vmatpush3.bf16.msra.mxu0 %v1459_v35 }
  0x5e   : > { %1353 = vmatprep.subr.bf16.mxu0 %v1544_v0 }
  0x61   : > { %1354 = vmatpush3.bf16.msra.mxu0 %v1460_v36 }
  0x62   : > { %1355 = vmatprep.subr.bf16.mxu0 %v1544_v0 }
  0x65   : > { %1356 = vmatpush3.bf16.msra.mxu0 %v1461_v37 }
  0x66   : > { %1357 = vmatprep.subr.bf16.mxu0 %v1544_v0 }
  0x69   : > { %1358 = vmatpush3.bf16.msra.mxu0 %v1462_v38 }
  0x6a   : > { %1359 = vmatprep.subr.bf16.mxu0 %v1544_v0 }
  0x6d   : > { %1360 = vmatpush3.bf16.msra.mxu0 %v1463_v39 }
  0x6e   : > { %1361 = vmatprep.subr.bf16.mxu0 %v1544_v0 }
  0x71   : > { %1362 = vmatpush3.bf16.msra.mxu0 %v1464_v40 }
  0x74   : > { %1364 = vmatmul.mubr.bf16.vlgmr.msra.gmra.mrb[4].mxu0 %v517_v17 }
 0x126   : > { %v734_v19 = vpop.f32.mrb[0].mxu1 }
 0x127   : > { %v735_v20 = vadd.f32 %v1240_v18, %v734_v19  ;;  %v1345_v21 = vpop.f32.mrb[1].mxu1  ;;  %v623_v24 = vpop.f32.mrb[0].mxu0 }
 0x128   : > { %v737_v22 = vpop.f32.mrb[2].mxu1  ;;  %v1325_v27 = vpop.f32.mrb[1].mxu0  ;;  %v624_v30 = vadd.f32 %v1231_v23, %v623_v24 }
 0x129   : > { %v852_v25 = vpack.c.bf16 %v735_v20, %v735_v20  ;;  %v1346_v26 = vpop.f32.mrb[3].mxu1  ;;  %v626_v28 = vpop.f32.mrb[2].mxu0 }
 0x12a   : > { %v1326_v31 = vpop.f32.mrb[3].mxu0  ;;  %v851_v32 = vpack.c.bf16 %v624_v30, %v624_v30 }
 0x12b   : > { %v858_v29 = vsel %vm853_vm1, %v852_v25, 0 }
 0x12c   : > { %1368 = vmatpush3.bf16.xpose.msra.mxu1 %v858_v29 }
 0x12d   : > { %1373 = vmatprep.subr.bf16.mxu1 %v1544_v0 }
 0x133   : > { %1370 = vmatmul.mubr.msk.bf16.vlgmr.msra.gmra.mrb[4].mxu1 %vm853_vm1, %v851_v32 }
 0x134   : > { %1375 = vmatprep.mubr.msk.bf16.mxu1 %vm1545_vm0, %v1544_v0 }
 0x147   : > { %v845_v54 = vpop.f32.mrb[4].mxu0 }
 0x148   : > { %v1365_v55 = vpop.f32.mrb[5].mxu0  ;;  %v846_v59 = vadd.f32 %v1249_v57, %v845_v54 }
 0x149   : > { %v848_v56 = vpop.f32.mrb[6].mxu0 }
 0x14a   : > { %v1366_v58 = vpop.f32.mrb[7].mxu0  ;;  %v922_v60 = vpack.c.bf16 %v846_v59, %v846_v59 }
 0x14c   : > { %v928_v61 = vsel %vm926_vm3, %v922_v60, 0 }
 0x14d   : > { %1374 = vmatpush3.bf16.msra.mxu1 %v928_v61 }
 0x206   : > { %v894_v41 = vpop.f32.mrb[4].mxu1 }
 0x207   : > { %v900_v43 = vmul.f32 0.17677669, %v894_v41  ;;  %v1371_v44 = vpop.f32.mrb[5].mxu1 }
 0x208   : > { %v897_v45 = vpop.f32.mrb[6].mxu1 }
 0x209   : > { %v1372_v46 = vpop.f32.mrb[7].mxu1  ;;  %v908_v47 = vadd.f32 %v1259_v42, %v900_v43 }
 0x20b   : > { %v910_v48 = vsel %vm909_vm2, %v908_v47, -inf }
 0x20c   : > { %911 = vmax.xlane.f32.xlu0 %v910_v48 }
 0x299   : > { %v912_v49 = vpop.xlane.xlu0 %911 }
 0x29a   : > { %v913_v50 = vsub.f32 %v908_v47, %v912_v49 }
 0x29c   : > { %v914_v51 = vmul.f32 1.442695, %v913_v50 }
 0x29e   : > { %1465 = vpow2.f32 %v914_v51 }
 0x2a8   : > { %v1466_v52 = vpop.eup %1465 }
 0x2a9   : > { %v916_v53 = vsel %vm909_vm2, %v1466_v52, 0.0 }
 0x2aa   : > { %917 = vadd.xlane.f32.xlu0 %v916_v53 }
 0x337   : > { %v918_v62 = vpop.xlane.xlu0 %917 }
 0x338   : > { %1467 = vrcp.f32 %v918_v62 }
 0x342   : > { %v1468_v63 = vpop.eup %1467 }
 0x343   : > { %v920_v1 = vmul.f32 %v1468_v63, %v1466_v52 }
 0x345   : > { %v921_v2 = vpack.c.bf16 %v920_v1, %v920_v1 }
 0x347   : > { %1376 = vmatmul.mubr.msk.bf16.vlgmr.msra.gmra.mrb[8].mxu1 %vm909_vm2, %v921_v2 }
 0x417   : > { %973 = sbr.rel (%p1261_p7) target bundleno = 1054 (0x41e), region = 68 }
 0x41a   : > { %v964_v3 = vpop.f32.mrb[8].mxu1 }
 0x41b   : > { %v1377_v4 = vpop.f32.mrb[9].mxu1 }
 0x41c   : > { %v967_v5 = vpop.f32.mrb[10].mxu1 }
 0x41d   : > { %v1378_v6 = vpop.f32.mrb[11].mxu1 }
 0x41e PF: > { %1379 = vmatprep.subr.bf16.mxu1 %v1544_v0  ;;  %v1469_v8 = vld [vmem:[%s1702_s12] sm:$0xff]   ;;  %1383 = vmatprep.mubr.msk.bf16.mxu1 %vm1545_vm0, %v1544_v0  ;;  %v1470_v9 = vld [vmem:[%s1702_s12 + $0x8] sm:$0xff]   ;;  %v976_v10 = vpack.c.bf16 %v964_v3, %v964_v3  ;;  %p1265_p9 = scmp.ne.s32.totalorder %s1525_s13, 3 }
 0x41f   : > { %1380 = vmatpush3.bf16.msra.mxu1 %v1469_v8  ;;  %v975_v11 = vld [vmem:[#allocation2] sm:$0xff]  ;;  %v1266_v18 = vld [vmem:[#allocation3] ss:$0 sm:$0xff] (!%p1265_p9) }
 0x420   : > { %1381 = vmatprep.subr.bf16.mxu1 %v1544_v0 }
 0x423   : > { %1382 = vmatpush3.bf16.msra.mxu1 %v1470_v9 }
 0x426   : > { %1384 = vmatmul.mubr.msk.bf16.vlgmr.msra.gmra.mrb[12].mxu1 %vm853_vm1, %v976_v10 }
 0x4f6   : > { %1041 = sbr.rel (%p1265_p9) target bundleno = 1289 (0x509), region = 72 }
 0x4f9   : > { %v1030_v12 = vpop.f32.mrb[12].mxu1 }
 0x4fa   : > { %v1036_v13 = vadd.f32 %v1030_v12, %v975_v11  ;;  %v1385_v14 = vpop.f32.mrb[13].mxu1 }
 0x4fb   : > { %v1033_v15 = vpop.f32.mrb[14].mxu1 }
 0x4fc   : > { %1037 = vst [vmem:[#allocation2] sm:$0xff] %v1036_v13  ;;  %v1386_v16 = vpop.f32.mrb[15].mxu1 }
 0x503   : > { %v1042_v17 = vld [vmem:[#allocation2] sm:$0xff] }
 0x504   : > { %v1050_v19 = vadd.f32 %v1266_v18, %v1042_v17 }
 0x506   : > { %v1051_v20 = vpack.c.bf16 %v1050_v19, %v1050_v19 }
 0x508   : > { %1052 = vst [vmem:[%s1718_s30] sm:$0xf] %v1051_v20 }
 0x509 PF: > { %s21_s17 = sadd.s32 1, %s1541_s17   ;;  %s1848_s13 = smov %s1533_s15 }
 0x50a   : > { %p18_p11 = scmp.ge.s32.totalorder %s21_s17, 10   ;;  %s1849_s14 = smov %s1537_s16 }
 0x50b   : > { %s1850_s15 = smov %s1853_s19  ;;  %s1851_s16 = smov %s1857_s20 }
 0x50c   :  { %20 = sbr.rel (!%p18_p11) target bundleno = 3 (0x3), region = 127 }
 0x513   :  { %1072 = vsyncpa [#allocation4], 1 }
 0x514   :  { %1074 = vsyncpa [#allocation4 + $0x1], 1 }

// kernel: madani_forward.13
= control target key start
LH: loop header
LB: loop body
LE: loop exit
PB: predicated region body
PF: predicated region fallthrough
CT: control target
= control target key end

     0   :  { %s145_s0 = inlined_call_operand.vmem [shape: bf16[16,128], index: 0, kind: input, shape index: {}]   ;;  %s146_s1 = inlined_call_operand.vmem [shape: bf16[16,128], index: 1, kind: input, shape index: {}]   ;;  %s147_s2 = inlined_call_operand.vmem [shape: f32[1,128], index: 2, kind: input, shape index: {}]   ;;  %s148_s3 = inlined_call_operand.vmem [shape: f32[1,128], index: 3, kind: input, shape index: {}]   ;;  %s149_s4 = inlined_call_operand.vmem [shape: bf16[16,128], index: 4, kind: output, shape index: {}]  }
   0x1   :  { %v89_v0 = vld [vmem:[%s145_s0] sm:$0xff]  }
   0x2   :  { %v93_v1 = vld [vmem:[%s146_s1] sm:$0xff]   ;;  %v90_v2 = vunpack.c.l.bf16 %v89_v0  ;;  %v91_v4 = vunpack.c.h.bf16 %v89_v0 }
   0x3   :  { %v94_v3 = vunpack.c.l.bf16 %v93_v1  ;;  %v95_v5 = vunpack.c.h.bf16 %v93_v1  ;;  %v82_v24 = vld [vmem:[%s147_s2] ss:$0 sm:$0xff] }
   0x4   :  { %v83_v28 = vld [vmem:[%s148_s3] ss:$0 sm:$0xff] }
   0x5   :  { %v25_v6 = vadd.f32 %v94_v3, %v90_v2  ;;  %v26_v7 = vadd.f32 %v95_v5, %v91_v4 }
   0x7   :  { %27 = vadd.xlane.f32.xlu0 %v25_v6 }
   0xb   :  { %29 = vadd.xlane.f32.xlu0 %v26_v7 }
  0x94   :  { %v28_v8 = vpop.xlane.xlu0 %27 }
  0x95   :  { %v32_v9 = vmul.f32 0.0078125, %v28_v8 }
  0x97   :  { %v34_v10 = vsub.f32 %v25_v6, %v32_v9 }
  0x98   :  { %v30_v11 = vpop.xlane.xlu0 %29 }
  0x99   :  { %v33_v12 = vmul.f32 0.0078125, %v30_v11  ;;  %v36_v13 = vmul.f32 %v34_v10, %v34_v10 }
  0x9b   :  { %v35_v14 = vsub.f32 %v26_v7, %v33_v12  ;;  %38 = vadd.xlane.f32.xlu1 %v36_v13 }
  0x9d   :  { %v37_v15 = vmul.f32 %v35_v14, %v35_v14 }
  0x9f   :  { %40 = vadd.xlane.f32.xlu1 %v37_v15 }
 0x128   :  { %v39_v16 = vpop.xlane.xlu1 %38 }
 0x129   :  { %v42_v17 = vmul.f32 0.0078125, %v39_v16 }
 0x12b   :  { %v44_v18 = vadd.f32 1e-05, %v42_v17 }
 0x12c   :  { %v41_v19 = vpop.xlane.xlu1 %40 }
 0x12d   :  { %101 = vrsqrt.f32 %v44_v18  ;;  %v43_v20 = vmul.f32 0.0078125, %v41_v19 }
 0x12f   :  { %v45_v21 = vadd.f32 1e-05, %v43_v20 }
 0x131   :  { %103 = vrsqrt.f32 %v45_v21 }
 0x137   :  { %v102_v22 = vpop.eup %101 }
 0x138   :  { %v48_v23 = vmul.f32 %v102_v22, %v34_v10 }
 0x13a   :  { %v57_v26 = vmul.f32 %v82_v24, %v48_v23 }
 0x13b   :  { %v104_v25 = vpop.eup %103 }
 0x13c   :  { %v49_v27 = vmul.f32 %v104_v25, %v35_v14  ;;  %v66_v30 = vadd.f32 %v83_v28, %v57_v26 }
 0x13e   :  { %v58_v29 = vmul.f32 %v82_v24, %v49_v27 }
 0x140   :  { %v67_v31 = vadd.f32 %v83_v28, %v58_v29 }
 0x142   :  { %v99_v32 = vpack.c.bf16 %v67_v31, %v66_v30 }
 0x144   :  { %100 = vst [vmem:[%s149_s4] sm:$0xff] %v99_v32  }

// kernel: madani_forward.17
= control target key start
LH: loop header
LB: loop body
LE: loop exit
PB: predicated region body
PF: predicated region fallthrough
CT: control target
= control target key end

     0   :  { %9 = vsyncpa [#allocation3], 0  ;;  %s241_s0 = inlined_call_operand.vmem [shape: bf16[16,128], index: 0, kind: input, shape index: {}]   ;;  %s242_s1 = inlined_call_operand.vmem [shape: bf16[16,128], index: 1, kind: input, shape index: {}]   ;;  %s243_s2 = inlined_call_operand.hbm [shape: f32[1,128], index: 2, kind: input, shape index: {}]   ;;  %s244_s3 = inlined_call_operand.hbm [shape: f32[1,128], index: 3, kind: input, shape index: {}]   ;;  %s245_s4 = inlined_call_operand.vmem [shape: bf16[16,128], index: 4, kind: output, shape index: {}]  }
   0x1   :  { %10 = vsyncpa [#allocation5], 0  ;;  %s181_s15 = smov [#allocation2]   ;;  %s182_s17 = smov [#allocation4]  }
   0x2   :  { %s21_s16 = sshll.u32 %s181_s15, 4  ;;  %s31_s18 = sshll.u32 %s182_s17, 4  ;;  %s22_s16 = int_to_ptr.vmem [resolvable:$true] %s21_s16  ;;  %s32_s18 = int_to_ptr.vmem [resolvable:$true] %s31_s18 }
   0x3   :  { %s133_s21 = scalar_lea.hbm %s243_s2, 16 }
   0x4   :  { %p134_p0 = scmp.ne.s32.totalorder %s243_s2, %s133_s21  ;;  %p137_p1 = scmp.lt.u32.totalorder %s133_s21, %s243_s2 }
   0x6   :  { %p139_p2 = pnand %p137_p1, %p134_p0 }
   0x8   :  { %142 = shalt.err (!%p139_p2)
}
   0x9   :  { %s143_s26 = scalar_lea.vmem %s22_s16, 16  ;;  %s147_s27 = scalar_lea.vmem %s22_s16, 32 }
   0xa   :  { %p144_p3 = scmp.ne.s32.totalorder %s22_s16, %s143_s26  ;;  %p148_p4 = scmp.lt.s32.totalorder %s22_s16, %s22_s16 }
   0xb   :  { %p149_p5 = scmp.lt.s32.totalorder %s147_s27, %s143_s26 }
   0xd   :  { %p150_p6 = por %p149_p5, %p148_p4 }
   0xf   :  { %p151_p7 = pnand %p150_p6, %p144_p3 }
  0x11   :  { %154 = shalt.err (!%p151_p7)
}
  0x12   :  { %24 = dma.hbm_to_vmem [thread:$0]  %s243_s2, 16, %s22_s16, [#allocation3]  }
  0x13   :  { %s155_s6 = scalar_lea.hbm %s244_s3, 16 }
  0x14   :  { %p156_p8 = scmp.ne.s32.totalorder %s244_s3, %s155_s6  ;;  %p159_p9 = scmp.lt.u32.totalorder %s155_s6, %s244_s3 }
  0x16   :  { %p161_p10 = pnand %p159_p9, %p156_p8 }
  0x18   :  { %164 = shalt.err (!%p161_p10)
}
  0x19   :  { %s165_s11 = scalar_lea.vmem %s32_s18, 16  ;;  %s169_s12 = scalar_lea.vmem %s32_s18, 32 }
  0x1a   :  { %p166_p11 = scmp.ne.s32.totalorder %s32_s18, %s165_s11  ;;  %p170_p12 = scmp.lt.s32.totalorder %s32_s18, %s32_s18 }
  0x1b   :  { %p171_p13 = scmp.lt.s32.totalorder %s169_s12, %s165_s11 }
  0x1d   :  { %p172_p0 = por %p171_p13, %p170_p12 }
  0x1f   :  { %p173_p1 = pnand %p172_p0, %p166_p11 }
  0x21   :  { %176 = shalt.err (!%p173_p1)
}
  0x22   :  { %34 = dma.hbm_to_vmem [thread:$0]  %s244_s3, 16, %s32_s18, [#allocation5]  }
  0x23   :  { %177 = dma.done.wait [#allocation3], 16  }
  0x24   :  { %178 = vsyncadd [#allocation3], 4294967280 }
  0x25   :  { %179 = dma.done.wait [#allocation5], 16  }
  0x26   :  { %180 = vsyncadd [#allocation5], 4294967280  ;;  %v115_v0 = vld [vmem:[%s241_s0] sm:$0xff]  }
  0x27   :  { %v119_v1 = vld [vmem:[%s242_s1] sm:$0xff]   ;;  %v116_v2 = vunpack.c.l.bf16 %v115_v0  ;;  %v117_v4 = vunpack.c.h.bf16 %v115_v0 }
  0x28   :  { %v120_v3 = vunpack.c.l.bf16 %v119_v1  ;;  %v121_v5 = vunpack.c.h.bf16 %v119_v1  ;;  %v108_v24 = vld [vmem:[#allocation2] ss:$0 sm:$0xff]  ;;  %v109_v28 = vld [vmem:[#allocation4] ss:$0 sm:$0xff] }
  0x2a   :  { %v49_v6 = vadd.f32 %v120_v3, %v116_v2  ;;  %v50_v7 = vadd.f32 %v121_v5, %v117_v4 }
  0x2c   :  { %51 = vadd.xlane.f32.xlu0 %v49_v6 }
  0x30   :  { %53 = vadd.xlane.f32.xlu0 %v50_v7 }
  0xb9   :  { %v52_v8 = vpop.xlane.xlu0 %51 }
  0xba   :  { %v56_v9 = vmul.f32 0.0078125, %v52_v8 }
  0xbc   :  { %v58_v10 = vsub.f32 %v49_v6, %v56_v9 }
  0xbd   :  { %v54_v11 = vpop.xlane.xlu0 %53 }
  0xbe   :  { %v57_v12 = vmul.f32 0.0078125, %v54_v11  ;;  %v60_v13 = vmul.f32 %v58_v10, %v58_v10 }
  0xc0   :  { %v59_v14 = vsub.f32 %v50_v7, %v57_v12  ;;  %62 = vadd.xlane.f32.xlu1 %v60_v13 }
  0xc2   :  { %v61_v15 = vmul.f32 %v59_v14, %v59_v14 }
  0xc4   :  { %64 = vadd.xlane.f32.xlu1 %v61_v15 }
 0x14d   :  { %v63_v16 = vpop.xlane.xlu1 %62 }
 0x14e   :  { %v66_v17 = vmul.f32 0.0078125, %v63_v16 }
 0x150   :  { %v68_v18 = vadd.f32 1e-05, %v66_v17 }
 0x151   :  { %v65_v19 = vpop.xlane.xlu1 %64 }
 0x152   :  { %129 = vrsqrt.f32 %v68_v18  ;;  %v67_v20 = vmul.f32 0.0078125, %v65_v19 }
 0x154   :  { %v69_v21 = vadd.f32 1e-05, %v67_v20 }
 0x156   :  { %131 = vrsqrt.f32 %v69_v21 }
 0x15c   :  { %v130_v22 = vpop.eup %129 }
 0x15d   :  { %v72_v23 = vmul.f32 %v130_v22, %v58_v10 }
 0x15f   :  { %v81_v26 = vmul.f32 %v108_v24, %v72_v23 }
 0x160   :  { %v132_v25 = vpop.eup %131 }
 0x161   :  { %v73_v27 = vmul.f32 %v132_v25, %v59_v14  ;;  %v90_v30 = vadd.f32 %v109_v28, %v81_v26 }
 0x163   :  { %v82_v29 = vmul.f32 %v108_v24, %v73_v27 }
 0x165   :  { %v91_v31 = vadd.f32 %v109_v28, %v82_v29 }
 0x167   :  { %v125_v32 = vpack.c.bf16 %v91_v31, %v90_v30 }
 0x169   :  { %126 = vst [vmem:[%s245_s4] sm:$0xff] %v125_v32  }
 0x16a   :  { %106 = vsyncpa [#allocation3], 1 }
 0x16b   :  { %107 = vsyncpa [#allocation5], 1 }

// kernel: madani_forward.18
= control target key start
LH: loop header
LB: loop body
LE: loop exit
PB: predicated region body
PF: predicated region fallthrough
CT: control target
= control target key end

     0   :  { %vm19_vm0 = vcmask 31744   ;;  %v212_v0 = vmov 0.0   ;;  %vm213_vm1 = vmmov 0   ;;  %s276_s1 = inlined_call_operand.vmem [shape: bf16[128,4], index: 1, kind: input, shape index: {}]   ;;  %s277_s0 = inlined_call_operand.vmem [shape: bf16[16,128], index: 0, kind: input, shape index: {}]   ;;  %s278_s2 = inlined_call_operand.vmem [shape: f32[1,4], index: 2, kind: input, shape index: {}]   ;;  %s279_s3 = inlined_call_operand.vmem [shape: f32[16,4], index: 3, kind: output, shape index: {}]  }
   0x1   :  { %181 = vmatprep.subr.bf16.mxu0 %v212_v0  ;;  %v203_v1 = vld [vmem:[%s276_s1] sm:$0xff]   ;;  %197 = vmatprep.mubr.msk.bf16.mxu0 %vm213_vm1, %v212_v0  ;;  %20 = vst.msk [vmem:[#allocation2] sm:$0xff] %vm19_vm0, %v212_v0  ;;  %21 = vst.msk [vmem:[#allocation2 + $0x8] sm:$0xff] %vm19_vm0, %v212_v0  ;;  %v204_v2 = vld [vmem:[%s276_s1 + $0x8] sm:$0xff]  }
   0x2   :  { %182 = vmatpush3.bf16.msra.mxu0 %v203_v1  ;;  %v205_v3 = vld [vmem:[%s276_s1 + $0x10] sm:$0xff]   ;;  %v206_v4 = vld [vmem:[%s276_s1 + $0x18] sm:$0xff]   ;;  %v207_v5 = vld [vmem:[%s276_s1 + $0x20] sm:$0xff]  }
   0x3   :  { %183 = vmatprep.subr.bf16.mxu0 %v212_v0  ;;  %v208_v6 = vld [vmem:[%s276_s1 + $0x28] sm:$0xff]   ;;  %v209_v7 = vld [vmem:[%s276_s1 + $0x30] sm:$0xff]   ;;  %v210_v8 = vld [vmem:[%s276_s1 + $0x38] sm:$0xff]  }
   0x4   :  { %v211_v9 = vld [vmem:[%s277_s0] sm:$0xff]  }
   0x5   :  { %v171_v18 = vld [vmem:[%s278_s2] ss:$0 sm:$0xff] }
   0x6   :  { %184 = vmatpush3.bf16.msra.mxu0 %v204_v2 }
   0x7   :  { %185 = vmatprep.subr.bf16.mxu0 %v212_v0 }
   0x8   :  { %v22_v10 = vld [vmem:[#allocation2] sm:$0xff]  ;;  %v23_v12 = vld [vmem:[#allocation2 + $0x8] sm:$0xff] }
   0xa   :  { %186 = vmatpush3.bf16.msra.mxu0 %v205_v3 }
   0xb   :  { %187 = vmatprep.subr.bf16.mxu0 %v212_v0 }
   0xe   :  { %188 = vmatpush3.bf16.msra.mxu0 %v206_v4 }
   0xf   :  { %189 = vmatprep.subr.bf16.mxu0 %v212_v0 }
  0x12   :  { %190 = vmatpush3.bf16.msra.mxu0 %v207_v5 }
  0x13   :  { %191 = vmatprep.subr.bf16.mxu0 %v212_v0 }
  0x16   :  { %192 = vmatpush3.bf16.msra.mxu0 %v208_v6 }
  0x17   :  { %193 = vmatprep.subr.bf16.mxu0 %v212_v0 }
  0x1a   :  { %194 = vmatpush3.bf16.msra.mxu0 %v209_v7 }
  0x1b   :  { %195 = vmatprep.subr.bf16.mxu0 %v212_v0 }
  0x1e   :  { %196 = vmatpush3.bf16.msra.mxu0 %v210_v8 }
  0x21   :  { %198 = vmatmul.mubr.bf16.vlgmr.msra.gmra.mrb[0].mxu0 %v211_v9 }
  0xf4   :  { %v130_v11 = vpop.f32.mrb[0].mxu0 }
  0xf5   :  { %v137_v13 = vadd.f32 %v130_v11, %v22_v10  ;;  %v199_v14 = vpop.f32.mrb[1].mxu0 }
  0xf6   :  { %v133_v15 = vpop.f32.mrb[2].mxu0 }
  0xf7   :  { %140 = vst.msk [vmem:[#allocation2] sm:$0xff] %vm19_vm0, %v137_v13  ;;  %v138_v16 = vadd.f32 %v133_v15, %v23_v12  ;;  %v200_v17 = vpop.f32.mrb[3].mxu0 }
  0xf9   :  { %141 = vst.msk [vmem:[#allocation2 + $0x8] sm:$0xff] %vm19_vm0, %v138_v16 }
  0xfe   :  { %v145_v19 = vld [vmem:[#allocation2] sm:$0xff] }
  0xff   :  { %v154_v20 = vadd.f32 %v171_v18, %v145_v19 }
 0x100   :  { %v146_v21 = vld [vmem:[#allocation2 + $0x8] sm:$0xff] }
 0x101   :  { %156 = vst.msk [vmem:[%s279_s3] sm:$0xff] %vm19_vm0, %v154_v20  ;;  %v155_v22 = vadd.f32 %v171_v18, %v146_v21 }
 0x103   :  { %157 = vst.msk [vmem:[%s279_s3 + $0x8] sm:$0xff] %vm19_vm0, %v155_v22 }

// kernel: madani_forward.14
= control target key start
LH: loop header
LB: loop body
LE: loop exit
PB: predicated region body
PF: predicated region fallthrough
CT: control target
= control target key end

     0   :  { %v502_v1 = vmov 0   ;;  %v47_v34 = vlaneseq  ;;  %s641_s1 = inlined_call_operand.vmem [shape: bf16[128,256], index: 1, kind: input, shape index: {}]   ;;  %s642_s0 = inlined_call_operand.vmem [shape: bf16[16,128], index: 0, kind: input, shape index: {}]   ;;  %s643_s3 = inlined_call_operand.vmem [shape: bf16[256,128], index: 3, kind: input, shape index: {}]   ;;  %s644_s2 = inlined_call_operand.vmem [shape: f32[1,256], index: 2, kind: input, shape index: {}]   ;;  %s645_s4 = inlined_call_operand.vmem [shape: f32[1,128], index: 4, kind: input, shape index: {}]   ;;  %s646_s5 = inlined_call_operand.vmem [shape: bf16[16,128], index: 5, kind: output, shape index: {}]  }
   0x1   :  { %v461_v0 = vld [vmem:[%s641_s1 + $0x4] ss:$8 sps:$4 sm:$0xff]   ;;  %175 = vmatprep.mubr.bf16.mxu0 %v502_v1  ;;  %v463_v2 = vld [vmem:[%s641_s1] ss:$8 sps:$4 sm:$0xff]   ;;  %v464_v3 = vld [vmem:[%s641_s1 + $0x14] ss:$8 sps:$4 sm:$0xff]  }
   0x2   :  { %143 = vmatprep.subr.bf16.mxu0 %v461_v0  ;;  %v466_v4 = vld [vmem:[%s641_s1 + $0x10] ss:$8 sps:$4 sm:$0xff]   ;;  %v467_v5 = vld [vmem:[%s641_s1 + $0x24] ss:$8 sps:$4 sm:$0xff]   ;;  %v469_v6 = vld [vmem:[%s641_s1 + $0x20] ss:$8 sps:$4 sm:$0xff]  }
   0x3   :  { %144 = vmatpush1.bf16.msra.mxu0 %v463_v2  ;;  %v470_v7 = vld [vmem:[%s641_s1 + $0x34] ss:$8 sps:$4 sm:$0xff]   ;;  %v472_v8 = vld [vmem:[%s641_s1 + $0x30] ss:$8 sps:$4 sm:$0xff]   ;;  %v473_v9 = vld [vmem:[%s641_s1 + $0x44] ss:$8 sps:$4 sm:$0xff]  }
   0x4   :  { %145 = vmatprep.subr.bf16.mxu0 %v464_v3  ;;  %v486_v10 = vld [vmem:[%s643_s3 + $0x40] sm:$0xff]   ;;  %v476_v13 = vld [vmem:[%s641_s1 + $0x54] ss:$8 sps:$4 sm:$0xff]   ;;  %v488_v14 = vld [vmem:[%s643_s3 + $0x48] sm:$0xff]   ;;  %v48_v35 = vshrl.u32 %v47_v34, 7 }
   0x5   :  { %v475_v11 = vld [vmem:[%s641_s1 + $0x40] ss:$8 sps:$4 sm:$0xff]   ;;  %438 = vmatprep.subr.bf16.mxu1 %v486_v10  ;;  %v490_v16 = vld [vmem:[%s643_s3 + $0x50] sm:$0xff]   ;;  %v479_v18 = vld [vmem:[%s641_s1 + $0x64] ss:$8 sps:$4 sm:$0xff]  }
   0x6   :  { %v487_v12 = vld [vmem:[%s643_s3] sm:$0xff]   ;;  %v489_v15 = vld [vmem:[%s643_s3 + $0x8] sm:$0xff]   ;;  %v478_v17 = vld [vmem:[%s641_s1 + $0x50] ss:$8 sps:$4 sm:$0xff]   ;;  %v49_v36 = vsub.s32 0, %v48_v35  ;;  %v53_v38 = vsub.s32 1, %v48_v35 }
   0x7   :  { %146 = vmatpush1.bf16.msra.mxu0 %v466_v4  ;;  %439 = vmatpush3.bf16.msra.mxu1 %v487_v12  ;;  %v491_v19 = vld [vmem:[%s643_s3 + $0x10] sm:$0xff]   ;;  %v492_v20 = vld [vmem:[%s643_s3 + $0x58] sm:$0xff]   ;;  %v481_v21 = vld [vmem:[%s641_s1 + $0x60] ss:$8 sps:$4 sm:$0xff]  }
   0x8   :  { %147 = vmatprep.subr.bf16.mxu0 %v467_v5  ;;  %440 = vmatprep.subr.bf16.mxu1 %v488_v14  ;;  %v482_v22 = vld [vmem:[%s641_s1 + $0x74] ss:$8 sps:$4 sm:$0xff]   ;;  %v494_v24 = vld [vmem:[%s643_s3 + $0x60] sm:$0xff]   ;;  %v484_v25 = vld [vmem:[%s641_s1 + $0x70] ss:$8 sps:$4 sm:$0xff]  }
   0x9   :  { %v493_v23 = vld [vmem:[%s643_s3 + $0x18] sm:$0xff]   ;;  %v495_v26 = vld [vmem:[%s643_s3 + $0x20] sm:$0xff]   ;;  %v496_v27 = vld [vmem:[%s643_s3 + $0x68] sm:$0xff]  }
   0xa   :  { %v485_v28 = vld [vmem:[%s642_s0] sm:$0xff]   ;;  %v497_v29 = vld [vmem:[%s643_s3 + $0x28] sm:$0xff]   ;;  %v498_v30 = vld [vmem:[%s643_s3 + $0x70] sm:$0xff]  }
   0xb   :  { %148 = vmatpush1.bf16.msra.mxu0 %v469_v6  ;;  %441 = vmatpush3.bf16.msra.mxu1 %v489_v15  ;;  %v499_v31 = vld [vmem:[%s643_s3 + $0x30] sm:$0xff]   ;;  %v500_v32 = vld [vmem:[%s643_s3 + $0x78] sm:$0xff]   ;;  %v45_v37 = vld [vmem:[%s644_s2] sm:$0x3] }
   0xc   :  { %149 = vmatprep.subr.bf16.mxu0 %v470_v7  ;;  %442 = vmatprep.subr.bf16.mxu1 %v490_v16  ;;  %v501_v33 = vld [vmem:[%s643_s3 + $0x38] sm:$0xff]   ;;  %v50_v39 = vrot.slane %v45_v37, %v49_v36  ;;  %v54_v40 = vrot.slane %v45_v37, %v53_v38  ;;  %v428_v59 = vld [vmem:[%s645_s4] ss:$0 sm:$0xff] }
   0xf   :  { %150 = vmatpush1.bf16.msra.mxu0 %v472_v8  ;;  %443 = vmatpush3.bf16.msra.mxu1 %v491_v19 }
  0x10   :  { %151 = vmatprep.subr.bf16.mxu0 %v473_v9  ;;  %444 = vmatprep.subr.bf16.mxu1 %v492_v20 }
  0x13   :  { %152 = vmatpush1.bf16.msra.mxu0 %v475_v11  ;;  %445 = vmatpush3.bf16.msra.mxu1 %v493_v23 }
  0x14   :  { %153 = vmatprep.subr.bf16.mxu0 %v476_v13  ;;  %446 = vmatprep.subr.bf16.mxu1 %v494_v24 }
  0x17   :  { %154 = vmatpush1.bf16.msra.mxu0 %v478_v17  ;;  %447 = vmatpush3.bf16.msra.mxu1 %v495_v26 }
  0x18   :  { %155 = vmatprep.subr.bf16.mxu0 %v479_v18  ;;  %448 = vmatprep.subr.bf16.mxu1 %v496_v27 }
  0x1b   :  { %156 = vmatpush1.bf16.msra.mxu0 %v481_v21  ;;  %449 = vmatpush3.bf16.msra.mxu1 %v497_v29 }
  0x1c   :  { %157 = vmatprep.subr.bf16.mxu0 %v482_v22  ;;  %450 = vmatprep.subr.bf16.mxu1 %v498_v30 }
  0x1f   :  { %158 = vmatpush1.bf16.msra.mxu0 %v484_v25  ;;  %451 = vmatpush3.bf16.msra.mxu1 %v499_v31 }
  0x20   :  { %452 = vmatprep.subr.bf16.mxu1 %v500_v32 }
  0x22   :  { %176 = vmatmul.mubr.bf16.vlgmr.msra.gmra.mrb[0].mxu0 %v485_v28 }
  0x23   :  { %453 = vmatpush3.bf16.msra.mxu1 %v501_v33 }
  0xf5   :  { %v177_v41 = vpop.f32.mrb[0].mxu0 }
  0xf6   :  { %v178_v42 = vadd.f32 %v177_v41, %v50_v39  ;;  %v179_v43 = vpop.f32.mrb[1].mxu0 }
  0xf7   :  { %v180_v44 = vadd.f32 %v179_v43, %v54_v40  ;;  %v181_v45 = vpop.f32.mrb[2].mxu0 }
  0xf8   :  { %v182_v46 = vadd.f32 %v181_v45, %v50_v39  ;;  %v183_v47 = vpop.f32.mrb[3].mxu0  ;;  %v186_v49 = vmax.f32 %v178_v42, 0.0 }
  0xf9   :  { %v184_v48 = vadd.f32 %v183_v47, %v54_v40  ;;  %v187_v51 = vmax.f32 %v180_v44, 0.0 }
  0xfa   :  { %v188_v50 = vmax.f32 %v182_v46, 0.0 }
  0xfb   :  { %v189_v52 = vmax.f32 %v184_v48, 0.0 }
  0xfc   :  { %v190_v53 = vpack.c.bf16 %v188_v50, %v186_v49 }
  0xfd   :  { %v191_v54 = vpack.c.bf16 %v189_v52, %v187_v51 }
  0xff   :  { %354 = vmatprep.mubr.bf16.mxu1 %v191_v54 }
 0x100   :  { %355 = vmatmul.mubr.bf16.vlgmr.msra.gmra.mrb[0].mxu1 %v190_v53 }
 0x1d3   :  { %v454_v55 = vpop.f32.mrb[0].mxu1 }
 0x1d4   :  { %v455_v56 = vpop.f32.mrb[1].mxu1 }
 0x1d5   :  { %v456_v57 = vadd.f32 %v455_v56, %v454_v55  ;;  %v457_v58 = vpop.f32.mrb[2].mxu1 }
 0x1d6   :  { %v458_v60 = vpop.f32.mrb[3].mxu1 }
 0x1d7   :  { %v459_v61 = vadd.f32 %v458_v60, %v457_v58  ;;  %v379_v62 = vadd.f32 %v456_v57, %v428_v59 }
 0x1d9   :  { %v380_v63 = vadd.f32 %v459_v61, %v428_v59 }
 0x1db   :  { %v436_v0 = vpack.c.bf16 %v380_v63, %v379_v62 }
 0x1dd   :  { %437 = vst [vmem:[%s646_s5] sm:$0xff] %v436_v0  }

// kernel: madani_forward.19
= control target key start
LH: loop header
LB: loop body
LE: loop exit
PB: predicated region body
PF: predicated region fallthrough
CT: control target
= control target key end

     0   :  { %s1190_s21 = smov 0   ;;  %s1192_s22 = smov 0   ;;  %s1300_s0 = inlined_call_operand.vmem [shape: bf16[16,128], index: 0, kind: input, shape index: {}]   ;;  %s1301_s1 = inlined_call_operand.vmem [shape: bf16[4,128,256], index: 1, kind: input, shape index: {}]   ;;  %s1302_s2 = inlined_call_operand.vmem [shape: f32[4,1,256], index: 2, kind: input, shape index: {}]   ;;  %s1303_s3 = inlined_call_operand.vmem [shape: bf16[4,256,128], index: 3, kind: input, shape index: {}]   ;;  %s1304_s4 = inlined_call_operand.vmem [shape: f32[4,1,128], index: 4, kind: input, shape index: {}]   ;;  %s1305_s5 = inlined_call_operand.vmem [shape: f32[4,16,1], index: 5, kind: input, shape index: {}]   ;;  %s1306_s6 = inlined_call_operand.vmem [shape: bf16[16,128], index: 6, kind: output, shape index: {}]  }
   0x1   :  { %s1194_s23 = smov 0  }
   0x2 LB: > { %s31_s24 = sadd.s32 1, %s1147_s22  ;;  %p977_p0 = scmp.ge.s32.totalorder %s1151_s23, 1  ;;  %s1151_s23 = sphi %s1194_s23, %s16_s23   ;;  %s1147_s22 = sphi %s1192_s22, %s1308_s22   ;;  %s1143_s21 = sphi %s1190_s21, %s1307_s21  }
   0x3   : > { %p33_p1 = scmp.ge.s32.totalorder %s31_s24, 4  ;;  %p307_p2 = scmp.lt.s32.totalorder %s1151_s23, 5 }
   0x5   : > { %s1310_s24 = smov (%p33_p1, %s31_s24), 0  ;;  %p308_p3 = pnand %p977_p0, %p307_p2 }
   0x6   : > { %p382_p4 = scmp.lt.s32.totalorder (!%p308_p3), %s1143_s21, 3  ;;  %p430_p5 = scmp.eq.s32.totalorder (!%p308_p3), %s1143_s21, 0 }
   0x7   : > { %311 = sbr.rel (%p308_p3) target bundleno = 512 (0x200), region = 44 }
   0xe   : > { %s1213_s25 = scalar_select %p382_p4, %s1143_s21, 3 }
   0xf   : > { %435 = sbr.rel (!%p430_p5) target bundleno = 22 (0x16), region = 48  ;;  %v1153_v0 = vmov (%p430_p5), 0.0  }
  0x10   : > { %s1027_s26 = sshll.u32 %s1213_s25, 7  ;;  %s980_s27 = sshll.u32 %s1213_s25, 1  ;;  %436 = vst [vmem:[#allocation2] sm:$0xff] (%p430_p5), %v1153_v0  ;;  %437 = vst [vmem:[#allocation2 + $0x8] sm:$0xff] (%p430_p5), %v1153_v0 }
  0x11   : > { %s1220_s30 = scalar_lea.vmem %s1301_s1, %s1027_s26  ;;  %s1225_s9 = scalar_lea.vmem %s1302_s2, %s980_s27 }
  0x12   : > { %s1230_s12 = scalar_lea.vmem %s1303_s3, %s1027_s26  ;;  %s412_s15 = scalar_lea.vmem %s1304_s4, %s1213_s25 }
  0x13   : > { %s1029_s16 = sshll.u32 %s1213_s25, 4 }
  0x14   : > { %s1240_s19 = scalar_lea.vmem %s1305_s5, %s1029_s16 }
  0x16 PF: > { %v1088_v1 = vld [vmem:[%s1220_s30 + $0x4] ss:$8 sps:$4 sm:$0xff]   ;;  %v1090_v2 = vld [vmem:[%s1220_s30] ss:$8 sps:$4 sm:$0xff]   ;;  %v1154_v3 = vmov 0   ;;  %v1117_v17 = vld [vmem:[%s1230_s12 + $0x50] sm:$0xff]   ;;  %v458_v37 = vlaneseq }
  0x17   : > { %586 = vmatprep.mubr.bf16.mxu0 %v1154_v3  ;;  %1087 = vset.pattern.permute.xlu0 %v1154_v3  ;;  %v1091_v4 = vld [vmem:[%s1220_s30 + $0x14] ss:$8 sps:$4 sm:$0xff]   ;;  %v1093_v5 = vld [vmem:[%s1220_s30 + $0x10] ss:$8 sps:$4 sm:$0xff]   ;;  %v1094_v6 = vld [vmem:[%s1220_s30 + $0x24] ss:$8 sps:$4 sm:$0xff]  }
  0x18   : > { %554 = vmatprep.subr.bf16.mxu0 %v1088_v1  ;;  %v1096_v7 = vld [vmem:[%s1220_s30 + $0x20] ss:$8 sps:$4 sm:$0xff]   ;;  %v1097_v8 = vld [vmem:[%s1220_s30 + $0x34] ss:$8 sps:$4 sm:$0xff]   ;;  %v1099_v9 = vld [vmem:[%s1220_s30 + $0x30] ss:$8 sps:$4 sm:$0xff]  }
  0x19   : > { %555 = vmatpush1.bf16.msra.mxu0 %v1090_v2  ;;  %v1100_v10 = vld [vmem:[%s1220_s30 + $0x44] ss:$8 sps:$4 sm:$0xff]   ;;  %v1102_v12 = vld [vmem:[%s1220_s30 + $0x40] ss:$8 sps:$4 sm:$0xff]   ;;  %v1103_v14 = vld [vmem:[%s1220_s30 + $0x54] ss:$8 sps:$4 sm:$0xff]  }
  0x1a   : > { %556 = vmatprep.subr.bf16.mxu0 %v1091_v4  ;;  %v1113_v11 = vld [vmem:[%s1230_s12 + $0x40] sm:$0xff]   ;;  %v1115_v15 = vld [vmem:[%s1230_s12 + $0x48] sm:$0xff]   ;;  %v1105_v18 = vld [vmem:[%s1220_s30 + $0x50] ss:$8 sps:$4 sm:$0xff]   ;;  %v459_v38 = vshrl.u32 %v458_v37, 7  ;;  %p810_p6 = scmp.eq.s32.totalorder %s1143_s21, 3 }
  0x1b   : > { %v1114_v13 = vld [vmem:[%s1230_s12] sm:$0xff]   ;;  %1039 = vmatprep.subr.bf16.mxu1 %v1113_v11  ;;  %v1116_v16 = vld [vmem:[%s1230_s12 + $0x8] sm:$0xff]   ;;  %v1118_v20 = vld [vmem:[%s1230_s12 + $0x10] sm:$0xff]  }
  0x1c   : > { %1040 = vmatpush3.bf16.msra.mxu1 %v1114_v13  ;;  %v1106_v19 = vld [vmem:[%s1220_s30 + $0x64] ss:$8 sps:$4 sm:$0xff]   ;;  %v1119_v21 = vld [vmem:[%s1230_s12 + $0x58] sm:$0xff]   ;;  %v1108_v22 = vld [vmem:[%s1220_s30 + $0x60] ss:$8 sps:$4 sm:$0xff]   ;;  %v460_v39 = vsub.s32 0, %v459_v38 }
  0x1d   : > { %557 = vmatpush1.bf16.msra.mxu0 %v1093_v5  ;;  %1041 = vmatprep.subr.bf16.mxu1 %v1115_v15  ;;  %v1109_v23 = vld [vmem:[%s1220_s30 + $0x74] ss:$8 sps:$4 sm:$0xff]   ;;  %v1121_v25 = vld [vmem:[%s1230_s12 + $0x60] sm:$0xff]   ;;  %v1111_v26 = vld [vmem:[%s1220_s30 + $0x70] ss:$8 sps:$4 sm:$0xff]   ;;  %v464_v41 = vsub.s32 1, %v459_v38 }
  0x1e   : > { %558 = vmatprep.subr.bf16.mxu0 %v1094_v6  ;;  %v1120_v24 = vld [vmem:[%s1230_s12 + $0x18] sm:$0xff]   ;;  %v1122_v27 = vld [vmem:[%s1230_s12 + $0x20] sm:$0xff]   ;;  %v1123_v28 = vld [vmem:[%s1230_s12 + $0x68] sm:$0xff]  }
  0x1f   : > { %v1112_v29 = vld [vmem:[%s1300_s0] sm:$0xff]   ;;  %v1124_v30 = vld [vmem:[%s1230_s12 + $0x28] sm:$0xff]   ;;  %v1125_v31 = vld [vmem:[%s1230_s12 + $0x70] sm:$0xff]  }
  0x20   : > { %1042 = vmatpush3.bf16.msra.mxu1 %v1116_v16  ;;  %v1126_v32 = vld [vmem:[%s1230_s12 + $0x30] sm:$0xff]   ;;  %v1127_v33 = vld [vmem:[%s1230_s12 + $0x78] sm:$0xff]   ;;  %v772_v35 = vld [vmem:[%s1240_s19] sm:$0xff] }
  0x21   : > { %559 = vmatpush1.bf16.msra.mxu0 %v1096_v7  ;;  %1043 = vmatprep.subr.bf16.mxu1 %v1117_v17  ;;  %v1128_v34 = vld [vmem:[%s1230_s12 + $0x38] sm:$0xff]   ;;  %v773_v36 = vld [vmem:[%s1240_s19 + $0x8] sm:$0xff]  ;;  %v456_v40 = vld [vmem:[%s1225_s9] sm:$0x3] }
  0x22   : > { %560 = vmatprep.subr.bf16.mxu0 %v1097_v8  ;;  %778 = vperm.xlu0 %1087, %v772_v35   ;;  %v461_v42 = vrot.slane %v456_v40, %v460_v39  ;;  %v465_v43 = vrot.slane %v456_v40, %v464_v41  ;;  %v1019_v63 = vld [vmem:[%s412_s15] ss:$0 sm:$0xff]  ;;  %v775_v5 = vld [vmem:[#allocation2 + $0x8] sm:$0xff] }
  0x23   : > { %v774_v0 = vld [vmem:[#allocation2] sm:$0xff] }
  0x24   : > { %1044 = vmatpush3.bf16.msra.mxu1 %v1118_v20 }
  0x25   : > { %561 = vmatpush1.bf16.msra.mxu0 %v1099_v9  ;;  %1045 = vmatprep.subr.bf16.mxu1 %v1119_v21 }
  0x26   : > { %562 = vmatprep.subr.bf16.mxu0 %v1100_v10  ;;  %783 = vperm.xlu0 %1087, %v773_v36  }
  0x28   : > { %1046 = vmatpush3.bf16.msra.mxu1 %v1120_v24 }
  0x29   : > { %563 = vmatpush1.bf16.msra.mxu0 %v1102_v12  ;;  %1047 = vmatprep.subr.bf16.mxu1 %v1121_v25 }
  0x2a   : > { %564 = vmatprep.subr.bf16.mxu0 %v1103_v14 }
  0x2c   : > { %1048 = vmatpush3.bf16.msra.mxu1 %v1122_v27 }
  0x2d   : > { %565 = vmatpush1.bf16.msra.mxu0 %v1105_v18  ;;  %1049 = vmatprep.subr.bf16.mxu1 %v1123_v28 }
  0x2e   : > { %566 = vmatprep.subr.bf16.mxu0 %v1106_v19 }
  0x30   : > { %1050 = vmatpush3.bf16.msra.mxu1 %v1124_v30 }
  0x31   : > { %567 = vmatpush1.bf16.msra.mxu0 %v1108_v22  ;;  %1051 = vmatprep.subr.bf16.mxu1 %v1125_v31 }
  0x32   : > { %568 = vmatprep.subr.bf16.mxu0 %v1109_v23 }
  0x34   : > { %1052 = vmatpush3.bf16.msra.mxu1 %v1126_v32 }
  0x35   : > { %569 = vmatpush1.bf16.msra.mxu0 %v1111_v26  ;;  %1053 = vmatprep.subr.bf16.mxu1 %v1127_v33 }
  0x38   : > { %587 = vmatmul.mubr.bf16.vlgmr.msra.gmra.mrb[0].mxu0 %v1112_v29  ;;  %1054 = vmatpush3.bf16.msra.mxu1 %v1128_v34 }
  0xa1   : > { %v779_v58 = vpop.permute.xlu0 %778 }
  0xa2   : > { %v804_v6 = vmul.f32 %v1019_v63, %v779_v58 }
  0xa5   : > { %v784_v4 = vpop.permute.xlu0 %783 }
  0xa6   : > { %v805_v9 = vmul.f32 %v1019_v63, %v784_v4 }
 0x10b   : > { %v588_v44 = vpop.f32.mrb[0].mxu0 }
 0x10c   : > { %v589_v45 = vadd.f32 %v588_v44, %v461_v42  ;;  %v590_v46 = vpop.f32.mrb[1].mxu0 }
 0x10d   : > { %v591_v47 = vadd.f32 %v590_v46, %v465_v43  ;;  %v592_v48 = vpop.f32.mrb[2].mxu0 }
 0x10e   : > { %v593_v49 = vadd.f32 %v592_v48, %v461_v42  ;;  %v594_v50 = vpop.f32.mrb[3].mxu0  ;;  %v597_v52 = vmax.f32 %v589_v45, 0.0 }
 0x10f   : > { %v595_v51 = vadd.f32 %v594_v50, %v465_v43  ;;  %v598_v54 = vmax.f32 %v591_v47, 0.0 }
 0x110   : > { %v599_v53 = vmax.f32 %v593_v49, 0.0 }
 0x111   : > { %v600_v55 = vmax.f32 %v595_v51, 0.0 }
 0x112   : > { %v601_v56 = vpack.c.bf16 %v599_v53, %v597_v52 }
 0x113   : > { %v602_v57 = vpack.c.bf16 %v600_v55, %v598_v54 }
 0x115   : > { %763 = vmatprep.mubr.bf16.mxu1 %v602_v57 }
 0x116   : > { %764 = vmatmul.mubr.bf16.vlgmr.msra.gmra.mrb[0].mxu1 %v601_v56 }
 0x1e9   : > { %v1055_v59 = vpop.f32.mrb[0].mxu1 }
 0x1ea   : > { %v1056_v60 = vpop.f32.mrb[1].mxu1 }
 0x1eb   : > { %v1057_v61 = vadd.f32 %v1056_v60, %v1055_v59  ;;  %v1058_v62 = vpop.f32.mrb[2].mxu1 }
 0x1ec   : > { %v1059_v1 = vpop.f32.mrb[3].mxu1 }
 0x1ed   : > { %v786_v2 = vmul.f32 %v1057_v61, %v779_v58  ;;  %v1060_v3 = vadd.f32 %v1059_v1, %v1058_v62 }
 0x1ef   : > { %v788_v7 = vadd.f32 %v786_v2, %v774_v0  ;;  %v787_v8 = vmul.f32 %v1060_v3, %v784_v4  ;;  %814 = sbr.rel (!%p810_p6) target bundleno = 512 (0x200), region = 56 }
 0x1f1   : > { %v806_v10 = vadd.f32 %v804_v6, %v788_v7  ;;  %v789_v11 = vadd.f32 %v787_v8, %v775_v5 }
 0x1f3   : > { %808 = vst [vmem:[#allocation2] sm:$0xff] %v806_v10  ;;  %v807_v12 = vadd.f32 %v805_v9, %v789_v11 }
 0x1f5   : > { %809 = vst [vmem:[#allocation2 + $0x8] sm:$0xff] %v807_v12 }
 0x1fa   : > { %v815_v13 = vld [vmem:[#allocation2] sm:$0xff] }
 0x1fc   : > { %v816_v14 = vld [vmem:[#allocation2 + $0x8] sm:$0xff] }
 0x1fd   : > { %v1037_v15 = vpack.c.bf16 %v816_v14, %v815_v13 }
 0x1ff   : > { %1038 = vst [vmem:[%s1306_s6] sm:$0xff] %v1037_v15  }
 0x200 PF: > { %s16_s23 = sadd.s32 1, %s1151_s23   ;;  %s1307_s21 = smov %s1147_s22 }
 0x201   : > { %p13_p7 = scmp.ge.s32.totalorder %s16_s23, 6   ;;  %s1308_s22 = smov %s1310_s24 }
 0x203   :  { %15 = sbr.rel (!%p13_p7) target bundleno = 2 (0x2), region = 101 }

// kernel: madani_forward.21
= control target key start
LH: loop header
LB: loop body
LE: loop exit
PB: predicated region body
PF: predicated region fallthrough
CT: control target
= control target key end

     0   :  { %v647_v0 = vmov 0.0   ;;  %vm648_vm0 = vmmov 0   ;;  %vm426_vm5 = vcmask 523264   ;;  %vm471_vm6 = vcmask 23552   ;;  %s832_s1 = inlined_call_operand.vmem [shape: bf16[128,128], index: 1, kind: input, shape index: {}]   ;;  %s833_s3 = inlined_call_operand.vmem [shape: bf16[128,64], index: 3, kind: input, shape index: {}]   ;;  %s834_s5 = inlined_call_operand.vmem [shape: bf16[128,64], index: 5, kind: input, shape index: {}]   ;;  %s835_s0 = inlined_call_operand.vmem [shape: bf16[16,128], index: 0, kind: input, shape index: {}]   ;;  %s836_s6 = inlined_call_operand.vmem [shape: bf16[64,3], index: 6, kind: input, shape index: {}]   ;;  %s837_s2 = inlined_call_operand.vmem [shape: f32[1,128], index: 2, kind: input, shape index: {}]   ;;  %s838_s4 = inlined_call_operand.vmem [shape: f32[1,64], index: 4, kind: input, shape index: {}]   ;;  %s839_s7 = inlined_call_operand.vmem [shape: f32[1,3], index: 7, kind: input, shape index: {}]   ;;  %s840_s8 = inlined_call_operand.vmem [shape: f32[16,3], index: 8, kind: output, shape index: {}]  }
   0x1   :  { %543 = vmatprep.subr.bf16.mxu0 %v647_v0  ;;  %v617_v1 = vld [vmem:[%s832_s1] sm:$0xff]   ;;  %559 = vmatprep.mubr.msk.bf16.mxu0 %vm648_vm0, %v647_v0  ;;  %v618_v2 = vld [vmem:[%s832_s1 + $0x8] sm:$0xff]   ;;  %v619_v3 = vld [vmem:[%s832_s1 + $0x10] sm:$0xff]  }
   0x2   :  { %563 = vmatprep.subr.bf16.mxu1 %v647_v0  ;;  %579 = vmatprep.mubr.msk.bf16.mxu1 %vm648_vm0, %v647_v0  ;;  %v626_v4 = vld [vmem:[%s833_s3] sm:$0xff]   ;;  %v620_v5 = vld [vmem:[%s832_s1 + $0x18] sm:$0xff]   ;;  %v628_v6 = vld [vmem:[%s833_s3 + $0x8] sm:$0xff]  }
   0x3   :  { %544 = vmatpush3.bf16.msra.mxu0 %v617_v1  ;;  %564 = vmatpush3.bf16.msra.mxu1 %v626_v4  ;;  %v621_v7 = vld [vmem:[%s832_s1 + $0x20] sm:$0xff]   ;;  %v630_v8 = vld [vmem:[%s833_s3 + $0x10] sm:$0xff]   ;;  %v622_v9 = vld [vmem:[%s832_s1 + $0x28] sm:$0xff]  }
   0x4   :  { %545 = vmatprep.subr.bf16.mxu0 %v647_v0  ;;  %565 = vmatprep.subr.bf16.mxu1 %v647_v0  ;;  %v632_v10 = vld [vmem:[%s833_s3 + $0x18] sm:$0xff]   ;;  %v623_v11 = vld [vmem:[%s832_s1 + $0x30] sm:$0xff]   ;;  %v634_v12 = vld [vmem:[%s833_s3 + $0x20] sm:$0xff]  }
   0x5   :  { %v624_v13 = vld [vmem:[%s832_s1 + $0x38] sm:$0xff]   ;;  %v30_v14 = vld [vmem:[%s835_s0] sm:$0xff]   ;;  %v629_v16 = vld [vmem:[%s834_s5 + $0x8] sm:$0xff]  }
   0x6   :  { %v627_v15 = vld [vmem:[%s834_s5] sm:$0xff]   ;;  %v631_v17 = vld [vmem:[%s834_s5 + $0x10] sm:$0xff]   ;;  %v633_v18 = vld [vmem:[%s834_s5 + $0x18] sm:$0xff]   ;;  %v32_v30 = vunpack.c.l.bf16 %v30_v14  ;;  %v33_v35 = vunpack.c.h.bf16 %v30_v14 }
   0x7   :  { %546 = vmatpush3.bf16.msra.mxu0 %v618_v2  ;;  %566 = vmatpush3.bf16.msra.mxu1 %v628_v6  ;;  %v635_v19 = vld [vmem:[%s834_s5 + $0x20] sm:$0xff]   ;;  %v636_v20 = vld [vmem:[%s833_s3 + $0x28] sm:$0xff]   ;;  %v638_v22 = vld [vmem:[%s833_s3 + $0x30] sm:$0xff]  }
   0x8   :  { %547 = vmatprep.subr.bf16.mxu0 %v647_v0  ;;  %567 = vmatprep.subr.bf16.mxu1 %v647_v0  ;;  %v637_v21 = vld [vmem:[%s834_s5 + $0x28] sm:$0xff]   ;;  %v639_v23 = vld [vmem:[%s834_s5 + $0x30] sm:$0xff]   ;;  %v640_v24 = vld [vmem:[%s833_s3 + $0x38] sm:$0xff]  }
   0x9   :  { %v641_v25 = vld [vmem:[%s834_s5 + $0x38] sm:$0xff]   ;;  %v478_v26 = vld [vmem:[%s837_s2] ss:$0 sm:$0xff]  ;;  %v643_v43 = vld [vmem:[%s836_s6 + $0x8] sm:$0xff]  }
   0xa   :  { %v642_v41 = vld [vmem:[%s836_s6] sm:$0xff]   ;;  %v644_v44 = vld [vmem:[%s836_s6 + $0x10] sm:$0xff]   ;;  %v645_v45 = vld [vmem:[%s836_s6 + $0x18] sm:$0xff]  }
   0xb   :  { %548 = vmatpush3.bf16.msra.mxu0 %v619_v3  ;;  %568 = vmatpush3.bf16.msra.mxu1 %v630_v8  ;;  %v488_v46 = vld [vmem:[%s838_s4] ss:$0 sm:$0xff] }
   0xc   :  { %549 = vmatprep.subr.bf16.mxu0 %v647_v0  ;;  %569 = vmatprep.subr.bf16.mxu1 %v647_v0 }
   0xf   :  { %550 = vmatpush3.bf16.msra.mxu0 %v620_v5  ;;  %570 = vmatpush3.bf16.msra.mxu1 %v632_v10 }
  0x10   :  { %551 = vmatprep.subr.bf16.mxu0 %v647_v0  ;;  %571 = vmatprep.subr.bf16.mxu1 %v647_v0 }
  0x13   :  { %552 = vmatpush3.bf16.msra.mxu0 %v621_v7  ;;  %572 = vmatpush3.bf16.msra.mxu1 %v634_v12 }
  0x14   :  { %553 = vmatprep.subr.bf16.mxu0 %v647_v0  ;;  %573 = vmatprep.subr.bf16.mxu1 %v647_v0 }
  0x17   :  { %554 = vmatpush3.bf16.msra.mxu0 %v622_v9  ;;  %574 = vmatpush3.bf16.msra.mxu1 %v636_v20 }
  0x18   :  { %555 = vmatprep.subr.bf16.mxu0 %v647_v0  ;;  %575 = vmatprep.subr.bf16.mxu1 %v647_v0 }
  0x1b   :  { %556 = vmatpush3.bf16.msra.mxu0 %v623_v11  ;;  %576 = vmatpush3.bf16.msra.mxu1 %v638_v22 }
  0x1c   :  { %557 = vmatprep.subr.bf16.mxu0 %v647_v0  ;;  %577 = vmatprep.subr.bf16.mxu1 %v647_v0 }
  0x1f   :  { %558 = vmatpush3.bf16.msra.mxu0 %v624_v13  ;;  %578 = vmatpush3.bf16.msra.mxu1 %v640_v24 }
  0x20   :  { %583 = vmatprep.subr.bf16.mxu0 %v647_v0  ;;  %603 = vmatprep.subr.bf16.mxu1 %v647_v0 }
  0x22   :  { %560 = vmatmul.mubr.bf16.vlgmr.msra.gmra.mrb[0].mxu0 %v30_v14 }
  0x23   :  { %584 = vmatpush3.bf16.msra.mxu0 %v627_v15  ;;  %599 = vmatprep.mubr.msk.bf16.mxu0 %vm648_vm0, %v647_v0 }
  0x24   :  { %585 = vmatprep.subr.bf16.mxu0 %v647_v0 }
  0x27   :  { %586 = vmatpush3.bf16.msra.mxu0 %v629_v16 }
  0x28   :  { %587 = vmatprep.subr.bf16.mxu0 %v647_v0 }
  0x2b   :  { %588 = vmatpush3.bf16.msra.mxu0 %v631_v17 }
  0x2c   :  { %589 = vmatprep.subr.bf16.mxu0 %v647_v0 }
  0x2f   :  { %590 = vmatpush3.bf16.msra.mxu0 %v633_v18 }
  0x30   :  { %591 = vmatprep.subr.bf16.mxu0 %v647_v0 }
  0x33   :  { %592 = vmatpush3.bf16.msra.mxu0 %v635_v19 }
  0x34   :  { %593 = vmatprep.subr.bf16.mxu0 %v647_v0 }
  0x37   :  { %594 = vmatpush3.bf16.msra.mxu0 %v637_v21 }
  0x38   :  { %595 = vmatprep.subr.bf16.mxu0 %v647_v0 }
  0x3b   :  { %596 = vmatpush3.bf16.msra.mxu0 %v639_v23 }
  0x3c   :  { %597 = vmatprep.subr.bf16.mxu0 %v647_v0 }
  0x3f   :  { %598 = vmatpush3.bf16.msra.mxu0 %v641_v25 }
  0xf5   :  { %v145_v27 = vpop.f32.mrb[0].mxu0 }
  0xf6   :  { %v146_v28 = vadd.f32 %v478_v26, %v145_v27  ;;  %v561_v29 = vpop.f32.mrb[1].mxu0 }
  0xf7   :  { %v148_v31 = vpop.f32.mrb[2].mxu0 }
  0xf8   :  { %vm152_vm1 = vcmp.gt.f32.partialorder %v146_v28, 0.0  ;;  %v154_v32 = vmul.f32 0.01, %v146_v28  ;;  %v149_v33 = vadd.f32 %v478_v26, %v148_v31  ;;  %v562_v34 = vpop.f32.mrb[3].mxu0 }
  0xfa   :  { %v156_v36 = vsel %vm152_vm1, %v146_v28, %v154_v32  ;;  %vm153_vm2 = vcmp.gt.f32.partialorder %v149_v33, 0.0  ;;  %v155_v37 = vmul.f32 0.01, %v149_v33 }
  0xfb   :  { %v158_v38 = vadd.f32 %v156_v36, %v32_v30 }
  0xfc   :  { %v157_v39 = vsel %vm153_vm2, %v149_v33, %v155_v37 }
  0xfd   :  { %v159_v40 = vadd.f32 %v157_v39, %v33_v35 }
  0xff   :  { %v160_v42 = vpack.c.bf16 %v159_v40, %v158_v38 }
 0x101   :  { %580 = vmatmul.mubr.bf16.vlgmr.msra.gmra.mrb[0].mxu1 %v160_v42  ;;  %600 = vmatmul.mubr.bf16.vlgmr.msra.gmra.mrb[4].mxu0 %v160_v42 }
 0x102   :  { %604 = vmatpush3.bf16.msra.mxu1 %v642_v41  ;;  %611 = vmatprep.mubr.msk.bf16.mxu1 %vm648_vm0, %v647_v0 }
 0x103   :  { %605 = vmatprep.subr.bf16.mxu1 %v647_v0 }
 0x106   :  { %606 = vmatpush3.bf16.msra.mxu1 %v643_v43 }
 0x107   :  { %607 = vmatprep.subr.bf16.mxu1 %v647_v0 }
 0x10a   :  { %608 = vmatpush3.bf16.msra.mxu1 %v644_v44 }
 0x10b   :  { %609 = vmatprep.subr.bf16.mxu1 %v647_v0  ;;  %v505_v0 = vld [vmem:[%s839_s7] ss:$0 sm:$0xff] }
 0x10e   :  { %610 = vmatpush3.bf16.msra.mxu1 %v645_v45 }
 0x1d4   :  { %v266_v47 = vpop.f32.mrb[0].mxu1  ;;  %v377_v48 = vpop.f32.mrb[4].mxu0 }
 0x1d5   :  { %v267_v49 = vadd.f32 %v488_v46, %v266_v47  ;;  %v581_v50 = vpop.f32.mrb[1].mxu1  ;;  %v601_v51 = vpop.f32.mrb[5].mxu0 }
 0x1d6   :  { %v269_v52 = vpop.f32.mrb[2].mxu1  ;;  %v380_v53 = vpop.f32.mrb[6].mxu0 }
 0x1d7   :  { %v275_v54 = vmul.f32 0.01, %v267_v49  ;;  %vm273_vm3 = vcmp.gt.f32.partialorder %v267_v49, 0.0  ;;  %v270_v55 = vadd.f32 %v488_v46, %v269_v52  ;;  %v582_v56 = vpop.f32.mrb[3].mxu1  ;;  %v602_v57 = vpop.f32.mrb[7].mxu0 }
 0x1d9   :  { %v277_v58 = vsel %vm273_vm3, %v267_v49, %v275_v54  ;;  %v276_v59 = vmul.f32 0.01, %v270_v55  ;;  %vm274_vm4 = vcmp.gt.f32.partialorder %v270_v55, 0.0 }
 0x1da   :  { %v384_v60 = vadd.f32 %v377_v48, %v277_v58 }
 0x1db   :  { %v278_v61 = vsel %vm274_vm4, %v270_v55, %v276_v59 }
 0x1dc   :  { %v385_v62 = vadd.f32 %v380_v53, %v278_v61 }
 0x1de   :  { %v386_v63 = vpack.c.bf16 %v385_v62, %v384_v60 }
 0x1e0   :  { %612 = vmatmul.mubr.msk.bf16.vlgmr.msra.gmra.mrb[4].mxu1 %vm426_vm5, %v386_v63 }
 0x2b3   :  { %v464_v1 = vpop.f32.mrb[4].mxu1 }
 0x2b4   :  { %v465_v2 = vadd.f32 %v505_v0, %v464_v1  ;;  %v613_v3 = vpop.f32.mrb[5].mxu1 }
 0x2b5   :  { %v467_v4 = vpop.f32.mrb[6].mxu1 }
 0x2b6   :  { %472 = vst.msk [vmem:[%s840_s8] sm:$0xff] %vm471_vm6, %v465_v2  ;;  %v468_v5 = vadd.f32 %v505_v0, %v467_v4  ;;  %v614_v6 = vpop.f32.mrb[7].mxu1 }
 0x2b8   :  { %473 = vst.msk [vmem:[%s840_s8 + $0x8] sm:$0xff] %vm471_vm6, %v468_v5 }

</bundles_post_ra>
